<compile_context>
chip_gen: v7x
topology: tpu7x:2x2x1
jax: 0.10.0
libtpu: 0.0.40
codegen_flags: <defaults>
</compile_context>

<pallas_src>
import functools

import jax
import jax.numpy as jnp
from jax.experimental import pallas as pl
from jax.experimental.pallas import tpu as pltpu


def _fused_kernel(x_ref, w_ref, gb_ref, o_ref, *, m_valid, eps):
    # relu118: ReLU on the input.
    x = jnp.maximum(x_ref[...], 0.0)                                  # (Cin, M)

    # conv2d118: 1x1 conv, bias=False == (Cout_blk, Cin) @ (Cin, M) on the MXU.
    # bf16 operands (single MXU pass), f32 accumulation.
    y = jnp.dot(
        w_ref[...].astype(jnp.bfloat16),
        x.astype(jnp.bfloat16),
        preferred_element_type=jnp.float32,
    )                                                                 # (Cout_blk, M)

    # batchnorm2d119 (training mode): batch statistics over M per channel,
    # biased variance for normalization (PyTorch semantics). Mosaic masks the
    # padded lanes of the logical M=49 axis in these reductions, so no explicit
    # lane mask is needed. Affine is folded into one per-channel scale/shift.
    inv_m = jnp.float32(1.0 / m_valid)
    s1 = jnp.sum(y, axis=1, keepdims=True)                            # (Cout_blk, 1)
    s2 = jnp.sum(y * y, axis=1, keepdims=True)                        # (Cout_blk, 1)
    mean = s1 * inv_m
    var = jnp.maximum(s2 * inv_m - mean * mean, 0.0)  # clamp: f32 cancellation
    gamma = gb_ref[:, 0:1]                                            # (Cout_blk, 1)
    beta = gb_ref[:, 1:2]                                             # (Cout_blk, 1)
    scale = gamma * jax.lax.rsqrt(var + jnp.float32(eps))
    shift = beta - mean * scale

    # relu119: final ReLU. Padded-lane garbage is never stored (masked vst).
    o_ref[...] = jnp.maximum(y * scale + shift, 0.0)


def _num_cout_splits(cout):
    """2 on v7x (2 TensorCores/chip), 1 elsewhere. Correct either way."""
    try:
        kind = jax.devices()[0].device_kind.lower()
    except Exception:
        return 1
    if "v7" in kind and cout % 16 == 0:
        return 2
    return 1


def relu_conv1x1_bn_relu(x_nchw, weight_oihw, gamma, beta, *, eps=1e-5):
    """x_nchw: (N, Cin, H, W) f32; weight_oihw: (Cout, Cin, 1, 1) f32."""
    n, cin, h, w = x_nchw.shape
    cout = weight_oihw.shape[0]
    m = n * h * w

    # (N, Cin, H, W) -> (Cin, M). For the module's N=1 case this is a free
    # reshape (no transpose, no copy). General-N fallback needs one transpose.
    if n == 1:
        x_cm = x_nchw.reshape(cin, m)
    else:
        x_cm = jnp.transpose(x_nchw, (1, 0, 2, 3)).reshape(cin, m)

    # (Cout, Cin, 1, 1) -> (Cout, Cin): free reshape.
    w_mat = weight_oihw.reshape(cout, cin)

    # gamma/beta merged into a single (Cout, 2) input -> one small DMA.
    gb = jnp.stack(
        [gamma.astype(jnp.float32), beta.astype(jnp.float32)], axis=1
    )                                                                 # (Cout, 2)

    splits = _num_cout_splits(cout)
    cblk = cout // splits

    kernel = functools.partial(_fused_kernel, m_valid=int(m), eps=float(eps))

    cost = pl.CostEstimate(
        flops=2 * m * cin * cout,
        transcendentals=cout,  # one rsqrt per output channel
        bytes_accessed=4 * (cin * m * splits + cout * cin + cout * m + 2 * cout),
    )

    out_cm = pl.pallas_call(
        kernel,
        out_shape=jax.ShapeDtypeStruct((cout, m), jnp.float32),
        grid=(splits,),
        in_specs=[
            pl.BlockSpec((cin, m), lambda i: (0, 0)),       # x: same block to each core
            pl.BlockSpec((cblk, cin), lambda i: (i, 0)),    # w: split over Cout
            pl.BlockSpec((cblk, 2), lambda i: (i, 0)),      # gamma|beta: split over Cout
        ],
        out_specs=pl.BlockSpec((cblk, m), lambda i: (i, 0)),
        compiler_params=pltpu.CompilerParams(
            dimension_semantics=("parallel",),
        ),
        cost_estimate=cost,
    )(x_cm, w_mat, gb)

    # (Cout, M) -> NCHW. Free reshape for N=1.
    if n == 1:
        return out_cm.reshape(1, cout, h, w)
    return jnp.transpose(out_cm.reshape(cout, n, h, w), (1, 0, 2, 3))

    # TODO(synk): BatchNorm2d running_mean/running_var (momentum=0.1, unbiased
    # var) updates are not produced; only the forward activation is computed.


def _reference(x_nchw, weight_oihw, gamma, beta, *, eps=1e-5):
    """Pure-JAX reference of the fused module (training-mode BN)."""
    n, cin, h, w = x_nchw.shape
    cout = weight_oihw.shape[0]
    x = jnp.maximum(x_nchw, 0.0)
    x_rows = jnp.transpose(x, (0, 2, 3, 1)).reshape(n * h * w, cin)
    w_mat = weight_oihw.reshape(cout, cin).T
    y = jnp.dot(x_rows, w_mat, precision=jax.lax.Precision.HIGHEST)
    mean = jnp.mean(y, axis=0, keepdims=True)
    var = jnp.mean((y - mean) ** 2, axis=0, keepdims=True)  # biased (training)
    y_hat = (y - mean) * jax.lax.rsqrt(var + eps)
    out = jnp.maximum(y_hat * gamma[None, :] + beta[None, :], 0.0)
    return jnp.transpose(out.reshape(n, h, w, cout), (0, 3, 1, 2))


if __name__ == "__main__":
    key = jax.random.PRNGKey(0)
    k_x, k_w, k_g, k_b = jax.random.split(key, 4)

    # Shapes implied by the module's forward: x (1, 864, 7, 7), conv 864->128.
    N, CIN, H, W = 1, 864, 7, 7
    COUT = 128

    x = jax.random.normal(k_x, (N, CIN, H, W), dtype=jnp.float32)
    conv_w = jax.random.normal(k_w, (COUT, CIN, 1, 1), dtype=jnp.float32) * 0.02
    bn_gamma = 1.0 + 0.1 * jax.random.normal(k_g, (COUT,), dtype=jnp.float32)
    bn_beta = 0.1 * jax.random.normal(k_b, (COUT,), dtype=jnp.float32)

    out = relu_conv1x1_bn_relu(x, conv_w, bn_gamma, bn_beta, eps=1e-5)
    out = jax.block_until_ready(out)
    assert out.shape == (N, COUT, H, W), out.shape

    ref = jax.block_until_ready(_reference(x, conv_w, bn_gamma, bn_beta, eps=1e-5))
    max_err = float(jnp.max(jnp.abs(out - ref)))
    assert max_err < 2e-2, f"max abs error {max_err}"

    print("KERNEL_OK")
</pallas_src>

<mosaic_0001>
module attributes {stable_mosaic.version = 11 : i64} {
  func.func @_fused_kernel(%arg0: i32, %arg1: memref<864x49xf32, #tpu.memory_space<vmem>>, %arg2: memref<128x864xf32, #tpu.memory_space<vmem>>, %arg3: memref<128x2xf32, #tpu.memory_space<vmem>>, %arg4: memref<128x49xf32, #tpu.memory_space<vmem>>) attributes {dimension_semantics = [#tpu.dimension_semantics<parallel>], iteration_bounds = array<i64: 1>, scalar_prefetch = 0 : i64, scratch_operands = 0 : i64, tpu.core_type = #tpu.core_type<tc>, window_params = [{pipeline_mode = #tpu.pipeline_mode<synchronous>, transform_indices = @transform_0, window_bounds = array<i64: 864, 49>}, {transform_indices = @transform_1, window_bounds = array<i64: 128, 864>}, {transform_indices = @transform_2, window_bounds = array<i64: 128, 2>}, {transform_indices = @transform_3, window_bounds = array<i64: 128, 49>}]} {
    %c0 = arith.constant 0 : index
    %c0_0 = arith.constant 0 : index
    %0 = vector.load %arg1[%c0, %c0_0] : memref<864x49xf32, #tpu.memory_space<vmem>>, vector<864x49xf32>
    %cst = arith.constant 0.000000e+00 : f32
    %1 = vector.broadcast %cst : f32 to vector<864x49xf32>
    %2 = arith.maximumf %0, %1 : vector<864x49xf32>
    %c0_1 = arith.constant 0 : index
    %c0_2 = arith.constant 0 : index
    %3 = vector.load %arg2[%c0_1, %c0_2] : memref<128x864xf32, #tpu.memory_space<vmem>>, vector<128x864xf32>
    %4 = arith.truncf %3 : vector<128x864xf32> to vector<128x864xbf16>
    %5 = arith.truncf %2 : vector<864x49xf32> to vector<864x49xbf16>
    %cst_3 = arith.constant dense<0.000000e+00> : vector<128x49xf32>
    %6 = tpu.matmul %4, %5, %cst_3 {dimension_numbers = #tpu.dot_dimension_numbers<[1], [0], [0], [1], [0, 0, 1, 1], [], []>} : vector<128x864xbf16>, vector<864x49xbf16>, vector<128x49xf32> -> vector<128x49xf32>
    %cst_4 = arith.constant dense<0.000000e+00> : vector<128xf32>
    %7 = vector.multi_reduction <add>, %6, %cst_4 [1] : vector<128x49xf32> to vector<128xf32>
    %8 = vector.shape_cast %7 : vector<128xf32> to vector<128x1xf32>
    %9 = arith.mulf %6, %6 : vector<128x49xf32>
    %cst_5 = arith.constant dense<0.000000e+00> : vector<128xf32>
    %10 = vector.multi_reduction <add>, %9, %cst_5 [1] : vector<128x49xf32> to vector<128xf32>
    %11 = vector.shape_cast %10 : vector<128xf32> to vector<128x1xf32>
    %cst_6 = arith.constant 0.0204081628 : f32
    %12 = vector.broadcast %cst_6 : f32 to vector<128x1xf32>
    %13 = arith.mulf %8, %12 : vector<128x1xf32>
    %cst_7 = arith.constant 0.0204081628 : f32
    %14 = vector.broadcast %cst_7 : f32 to vector<128x1xf32>
    %15 = arith.mulf %11, %14 : vector<128x1xf32>
    %16 = arith.mulf %13, %13 : vector<128x1xf32>
    %17 = arith.subf %15, %16 : vector<128x1xf32>
    %cst_8 = arith.constant 0.000000e+00 : f32
    %18 = vector.broadcast %cst_8 : f32 to vector<128x1xf32>
    %19 = arith.maximumf %17, %18 : vector<128x1xf32>
    %c0_9 = arith.constant 0 : index
    %c0_10 = arith.constant 0 : index
    %20 = vector.load %arg3[%c0_9, %c0_10] : memref<128x2xf32, #tpu.memory_space<vmem>>, vector<128x1xf32>
    %c0_11 = arith.constant 0 : index
    %c1 = arith.constant 1 : index
    %21 = vector.load %arg3[%c0_11, %c1] : memref<128x2xf32, #tpu.memory_space<vmem>>, vector<128x1xf32>
    %cst_12 = arith.constant 9.99999974E-6 : f32
    %22 = vector.broadcast %cst_12 : f32 to vector<128x1xf32>
    %23 = arith.addf %19, %22 : vector<128x1xf32>
    %24 = math.rsqrt %23 : vector<128x1xf32>
    %25 = arith.mulf %20, %24 : vector<128x1xf32>
    %26 = arith.mulf %13, %25 : vector<128x1xf32>
    %27 = arith.subf %21, %26 : vector<128x1xf32>
    %28 = vector.broadcast %25 : vector<128x1xf32> to vector<128x49xf32>
    %29 = arith.mulf %6, %28 : vector<128x49xf32>
    %30 = vector.broadcast %27 : vector<128x1xf32> to vector<128x49xf32>
    %31 = arith.addf %29, %30 : vector<128x49xf32>
    %cst_13 = arith.constant 0.000000e+00 : f32
    %32 = vector.broadcast %cst_13 : f32 to vector<128x49xf32>
    %33 = arith.maximumf %31, %32 : vector<128x49xf32>
    %c0_14 = arith.constant 0 : index
    %c0_15 = arith.constant 0 : index
    %34 = vector.load %arg4[%c0_14, %c0_15] : memref<128x49xf32, #tpu.memory_space<vmem>>, vector<128x49xf32>
    tpu.vector_store %arg4[%c0_14, %c0_15], %33 {strides = array<i32>} : memref<128x49xf32, #tpu.memory_space<vmem>>, vector<128x49xf32>,
    return
  }
  func.func @transform_0(%arg0: i32) -> (i32, i32) {
    %c0_i32 = arith.constant 0 : i32
    %c0_i32_0 = arith.constant 0 : i32
    %c0_i32_1 = arith.constant 0 : i32
    return %c0_i32, %c0_i32_0 : i32, i32
  }
  func.func @transform_1(%arg0: i32) -> (i32, i32) {
    %c0_i32 = arith.constant 0 : i32
    %c0_i32_0 = arith.constant 0 : i32
    return %arg0, %c0_i32 : i32, i32
  }
  func.func @transform_2(%arg0: i32) -> (i32, i32) {
    %c0_i32 = arith.constant 0 : i32
    %c0_i32_0 = arith.constant 0 : i32
    return %arg0, %c0_i32 : i32, i32
  }
  func.func @transform_3(%arg0: i32) -> (i32, i32) {
    %c0_i32 = arith.constant 0 : i32
    %c0_i32_0 = arith.constant 0 : i32
    return %arg0, %c0_i32 : i32, i32
  }
}

</mosaic_0001>

<bundles_post_ra>
// kernel: tpu_custom_call.1
= control target key start
LH: loop header
LB: loop body
LE: loop exit
PB: predicated region body
PF: predicated region fallthrough
CT: control target
= control target key end

     0   :  { %vm453_vm0 = vcmask 785408   ;;  %vm866_vm1 = vcmask 400384   ;;  %s1729_s19 = smov 1   ;;  %s2920_s0 = inlined_call_operand.vmem [shape: f32[864,49], index: 0, kind: input, shape index: {}]   ;;  %s2921_s1 = inlined_call_operand.vmem [shape: f32[128,864], index: 1, kind: input, shape index: {}]   ;;  %s2922_s2 = inlined_call_operand.vmem [shape: f32[128,2], index: 2, kind: input, shape index: {}]   ;;  %s2923_s3 = inlined_call_operand.vmem [shape: f32[128,49], index: 3, kind: output, shape index: {}]  }
   0x1   :  { %v31_v0 = vld [vmem:[%s2920_s0 + $0x80] sm:$0xff]  ;;  %v32_v1 = vld [vmem:[%s2920_s0 + $0x88] sm:$0xff]  ;;  %v33_v14 = vld [vmem:[%s2920_s0 + $0x90] sm:$0xff] }
   0x2   :  { %v63_v2 = vld [vmem:[%s2920_s0 + $0x180] sm:$0xff]  ;;  %v139_v3 = vmax.f32 %v31_v0, 0.0  ;;  %v140_v4 = vmax.f32 %v32_v1, 0.0  ;;  %v64_v5 = vld [vmem:[%s2920_s0 + $0x188] sm:$0xff]  ;;  %v34_v18 = vld [vmem:[%s2920_s0 + $0x98] sm:$0xff]  ;;  %v141_v19 = vmax.f32 %v33_v14, 0.0 }
   0x3   :  { %v171_v6 = vmax.f32 %v63_v2, 0.0  ;;  %v15_v7 = vld [vmem:[%s2920_s0] sm:$0xff]  ;;  %v16_v8 = vld [vmem:[%s2920_s0 + $0x8] sm:$0xff]  ;;  %v172_v9 = vmax.f32 %v64_v5, 0.0  ;;  %v65_v20 = vld [vmem:[%s2920_s0 + $0x190] sm:$0xff]  ;;  %v142_v24 = vmax.f32 %v34_v18, 0.0 }
   0x4   :  { %v123_v10 = vmax.f32 %v15_v7, 0.0  ;;  %v124_v11 = vmax.f32 %v16_v8, 0.0  ;;  %v47_v12 = vld [vmem:[%s2920_s0 + $0x100] sm:$0xff]  ;;  %v48_v13 = vld [vmem:[%s2920_s0 + $0x108] sm:$0xff]  ;;  %v407_v15 = vpack.c.bf16 %v140_v4, %v139_v3  ;;  %v66_v21 = vld [vmem:[%s2920_s0 + $0x198] sm:$0xff]  ;;  %v173_v25 = vmax.f32 %v65_v20, 0.0 }
   0x5   :  { %v155_v16 = vmax.f32 %v47_v12, 0.0  ;;  %v156_v17 = vmax.f32 %v48_v13, 0.0  ;;  %v423_v22 = vpack.c.bf16 %v172_v9, %v171_v6  ;;  %v17_v26 = vld [vmem:[%s2920_s0 + $0x10] sm:$0xff]  ;;  %v18_v27 = vld [vmem:[%s2920_s0 + $0x18] sm:$0xff]  ;;  %v174_v30 = vmax.f32 %v66_v21, 0.0  ;;  %v35_v34 = vld [vmem:[%s2920_s0 + $0xa0] sm:$0xff] }
   0x6   :  { %v399_v23 = vpack.c.bf16 %v124_v11, %v123_v10  ;;  %v49_v28 = vld [vmem:[%s2920_s0 + $0x110] sm:$0xff]  ;;  %1455 = vmatprep.subr.bf16.mxu0 %v407_v15  ;;  %v125_v31 = vmax.f32 %v17_v26, 0.0  ;;  %v126_v32 = vmax.f32 %v18_v27, 0.0  ;;  %v50_v33 = vld [vmem:[%s2920_s0 + $0x118] sm:$0xff]  ;;  %v36_v35 = vld [vmem:[%s2920_s0 + $0xa8] sm:$0xff]  ;;  %v408_v36 = vpack.c.bf16 %v142_v24, %v141_v19 }
   0x7   :  { %v415_v29 = vpack.c.bf16 %v156_v17, %v155_v16  ;;  %1519 = vmatprep.subr.bf16.mxu1 %v423_v22  ;;  %v157_v37 = vmax.f32 %v49_v28, 0.0  ;;  %v158_v38 = vmax.f32 %v50_v33, 0.0  ;;  %v143_v39 = vmax.f32 %v35_v34, 0.0  ;;  %v67_v40 = vld [vmem:[%s2920_s0 + $0x1a0] sm:$0xff]  ;;  %v68_v41 = vld [vmem:[%s2920_s0 + $0x1a8] sm:$0xff]  ;;  %v37_v54 = vld [vmem:[%s2920_s0 + $0xb0] sm:$0xff] }
   0x8   :  { %1456 = vmatpush3.bf16.msra.mxu0 %v399_v23  ;;  %v19_v42 = vld [vmem:[%s2920_s0 + $0x20] sm:$0xff]  ;;  %v424_v43 = vpack.c.bf16 %v174_v30, %v173_v25  ;;  %v400_v44 = vpack.c.bf16 %v126_v32, %v125_v31  ;;  %v144_v45 = vmax.f32 %v36_v35, 0.0  ;;  %v175_v46 = vmax.f32 %v67_v40, 0.0  ;;  %v20_v47 = vld [vmem:[%s2920_s0 + $0x28] sm:$0xff]  ;;  %v38_v55 = vld [vmem:[%s2920_s0 + $0xb8] sm:$0xff] }
   0x9   :  { %1520 = vmatpush3.bf16.msra.mxu1 %v415_v29  ;;  %v51_v48 = vld [vmem:[%s2920_s0 + $0x120] sm:$0xff]  ;;  %v52_v49 = vld [vmem:[%s2920_s0 + $0x128] sm:$0xff]  ;;  %1457 = vmatprep.subr.bf16.mxu0 %v408_v36  ;;  %v416_v50 = vpack.c.bf16 %v158_v38, %v157_v37  ;;  %v176_v51 = vmax.f32 %v68_v41, 0.0  ;;  %v127_v52 = vmax.f32 %v19_v42, 0.0  ;;  %v128_v53 = vmax.f32 %v20_v47, 0.0  ;;  %v69_v56 = vld [vmem:[%s2920_s0 + $0x1b0] sm:$0xff] }
   0xa   :  { %1521 = vmatprep.subr.bf16.mxu1 %v424_v43  ;;  %v409_v57 = vpack.c.bf16 %v144_v45, %v143_v39  ;;  %v159_v58 = vmax.f32 %v51_v48, 0.0  ;;  %v160_v59 = vmax.f32 %v52_v49, 0.0  ;;  %v145_v60 = vmax.f32 %v37_v54, 0.0  ;;  %v70_v61 = vld [vmem:[%s2920_s0 + $0x1b8] sm:$0xff]  ;;  %v21_v62 = vld [vmem:[%s2920_s0 + $0x30] sm:$0xff]  ;;  %v39_v6 = vld [vmem:[%s2920_s0 + $0xc0] sm:$0xff] }
   0xb   :  { %v22_v63 = vld [vmem:[%s2920_s0 + $0x38] sm:$0xff]  ;;  %v425_v0 = vpack.c.bf16 %v176_v51, %v175_v46  ;;  %v401_v1 = vpack.c.bf16 %v128_v53, %v127_v52  ;;  %v146_v2 = vmax.f32 %v38_v55, 0.0  ;;  %v177_v3 = vmax.f32 %v69_v56, 0.0  ;;  %v53_v4 = vld [vmem:[%s2920_s0 + $0x130] sm:$0xff]  ;;  %v40_v11 = vld [vmem:[%s2920_s0 + $0xc8] sm:$0xff] }
   0xc   :  { %1458 = vmatpush3.bf16.msra.mxu0 %v400_v44  ;;  %v54_v5 = vld [vmem:[%s2920_s0 + $0x138] sm:$0xff]  ;;  %v417_v7 = vpack.c.bf16 %v160_v59, %v159_v58  ;;  %v178_v8 = vmax.f32 %v70_v61, 0.0  ;;  %v129_v9 = vmax.f32 %v21_v62, 0.0  ;;  %v130_v10 = vmax.f32 %v22_v63, 0.0  ;;  %v71_v12 = vld [vmem:[%s2920_s0 + $0x1c0] sm:$0xff]  ;;  %v72_v13 = vld [vmem:[%s2920_s0 + $0x1c8] sm:$0xff] }
   0xd   :  { %1522 = vmatpush3.bf16.msra.mxu1 %v416_v50  ;;  %1459 = vmatprep.subr.bf16.mxu0 %v409_v57  ;;  %v410_v14 = vpack.c.bf16 %v146_v2, %v145_v60  ;;  %v161_v15 = vmax.f32 %v53_v4, 0.0  ;;  %v162_v16 = vmax.f32 %v54_v5, 0.0  ;;  %v147_v17 = vmax.f32 %v39_v6, 0.0  ;;  %v23_v18 = vld [vmem:[%s2920_s0 + $0x40] sm:$0xff]  ;;  %v24_v19 = vld [vmem:[%s2920_s0 + $0x48] sm:$0xff]  ;;  %v41_v26 = vld [vmem:[%s2920_s0 + $0xd0] sm:$0xff] }
   0xe   :  { %1523 = vmatprep.subr.bf16.mxu1 %v425_v0  ;;  %v55_v20 = vld [vmem:[%s2920_s0 + $0x140] sm:$0xff]  ;;  %v426_v21 = vpack.c.bf16 %v178_v8, %v177_v3  ;;  %v402_v22 = vpack.c.bf16 %v130_v10, %v129_v9  ;;  %v148_v23 = vmax.f32 %v40_v11, 0.0  ;;  %v179_v24 = vmax.f32 %v71_v12, 0.0  ;;  %v56_v25 = vld [vmem:[%s2920_s0 + $0x148] sm:$0xff]  ;;  %v42_v27 = vld [vmem:[%s2920_s0 + $0xd8] sm:$0xff] }
   0xf   :  { %v418_v28 = vpack.c.bf16 %v162_v16, %v161_v15  ;;  %v180_v29 = vmax.f32 %v72_v13, 0.0  ;;  %v131_v30 = vmax.f32 %v23_v18, 0.0  ;;  %v132_v31 = vmax.f32 %v24_v19, 0.0  ;;  %v73_v32 = vld [vmem:[%s2920_s0 + $0x1d0] sm:$0xff]  ;;  %v74_v33 = vld [vmem:[%s2920_s0 + $0x1d8] sm:$0xff]  ;;  %v43_v45 = vld [vmem:[%s2920_s0 + $0xe0] sm:$0xff] }
  0x10   :  { %1460 = vmatpush3.bf16.msra.mxu0 %v401_v1  ;;  %v25_v34 = vld [vmem:[%s2920_s0 + $0x50] sm:$0xff]  ;;  %v411_v35 = vpack.c.bf16 %v148_v23, %v147_v17  ;;  %v163_v36 = vmax.f32 %v55_v20, 0.0  ;;  %v164_v37 = vmax.f32 %v56_v25, 0.0  ;;  %v149_v38 = vmax.f32 %v41_v26, 0.0  ;;  %v26_v39 = vld [vmem:[%s2920_s0 + $0x58] sm:$0xff]  ;;  %v44_v46 = vld [vmem:[%s2920_s0 + $0xe8] sm:$0xff] }
  0x11   :  { %1524 = vmatpush3.bf16.msra.mxu1 %v417_v7  ;;  %1461 = vmatprep.subr.bf16.mxu0 %v410_v14  ;;  %v57_v40 = vld [vmem:[%s2920_s0 + $0x150] sm:$0xff]  ;;  %v427_v41 = vpack.c.bf16 %v180_v29, %v179_v24  ;;  %v150_v42 = vmax.f32 %v42_v27, 0.0  ;;  %v181_v43 = vmax.f32 %v73_v32, 0.0  ;;  %v58_v44 = vld [vmem:[%s2920_s0 + $0x158] sm:$0xff]  ;;  %v182_v47 = vmax.f32 %v74_v33, 0.0  ;;  %v75_v50 = vld [vmem:[%s2920_s0 + $0x1e0] sm:$0xff] }
  0x12   :  { %1525 = vmatprep.subr.bf16.mxu1 %v426_v21  ;;  %v133_v48 = vmax.f32 %v25_v34, 0.0  ;;  %v134_v49 = vmax.f32 %v26_v39, 0.0  ;;  %v76_v51 = vld [vmem:[%s2920_s0 + $0x1e8] sm:$0xff]  ;;  %v403_v52 = vpack.c.bf16 %v132_v31, %v131_v30  ;;  %v419_v53 = vpack.c.bf16 %v164_v37, %v163_v36  ;;  %v27_v55 = vld [vmem:[%s2920_s0 + $0x60] sm:$0xff]  ;;  %v45_v63 = vld [vmem:[%s2920_s0 + $0xf0] sm:$0xff] }
  0x13   :  { %v165_v54 = vmax.f32 %v57_v40, 0.0  ;;  %v28_v56 = vld [vmem:[%s2920_s0 + $0x68] sm:$0xff]  ;;  %v59_v57 = vld [vmem:[%s2920_s0 + $0x160] sm:$0xff]  ;;  %v412_v58 = vpack.c.bf16 %v150_v42, %v149_v38  ;;  %v166_v59 = vmax.f32 %v58_v44, 0.0  ;;  %v151_v60 = vmax.f32 %v43_v45, 0.0  ;;  %v46_v0 = vld [vmem:[%s2920_s0 + $0xf8] sm:$0xff] }
  0x14   :  { %1462 = vmatpush3.bf16.msra.mxu0 %v402_v22  ;;  %v152_v61 = vmax.f32 %v44_v46, 0.0  ;;  %v60_v62 = vld [vmem:[%s2920_s0 + $0x168] sm:$0xff]  ;;  %v428_v1 = vpack.c.bf16 %v182_v47, %v181_v43  ;;  %v183_v2 = vmax.f32 %v75_v50, 0.0  ;;  %v184_v3 = vmax.f32 %v76_v51, 0.0  ;;  %v77_v4 = vld [vmem:[%s2920_s0 + $0x1f0] sm:$0xff]  ;;  %v78_v8 = vld [vmem:[%s2920_s0 + $0x1f8] sm:$0xff] }
  0x15   :  { %1526 = vmatpush3.bf16.msra.mxu1 %v418_v28  ;;  %1463 = vmatprep.subr.bf16.mxu0 %v411_v35  ;;  %v404_v5 = vpack.c.bf16 %v134_v49, %v133_v48  ;;  %v135_v6 = vmax.f32 %v27_v55, 0.0  ;;  %v136_v7 = vmax.f32 %v28_v56, 0.0  ;;  %v232_v9 = vld [vmem:[%s2921_s1 + $0x8] sm:$0xff]  ;;  %v239_v10 = vld [vmem:[%s2921_s1 + $0x40] sm:$0xff]  ;;  %v167_v11 = vmax.f32 %v59_v57, 0.0  ;;  %v234_v15 = vld [vmem:[%s2921_s1 + $0x18] sm:$0xff] }
  0x16   :  { %1527 = vmatprep.subr.bf16.mxu1 %v427_v41  ;;  %v168_v12 = vmax.f32 %v60_v62, 0.0  ;;  %v153_v13 = vmax.f32 %v45_v63, 0.0  ;;  %v154_v14 = vmax.f32 %v46_v0, 0.0  ;;  %v241_v16 = vld [vmem:[%s2921_s1 + $0x50] sm:$0xff]  ;;  %v420_v17 = vpack.c.bf16 %v166_v59, %v165_v54  ;;  %v30_v20 = vld [vmem:[%s2920_s0 + $0x78] sm:$0xff]  ;;  %v95_v27 = vld [vmem:[%s2920_s0 + $0x280] sm:$0xff] }
  0x17   :  { %v413_v18 = vpack.c.bf16 %v152_v61, %v151_v60  ;;  %v29_v19 = vld [vmem:[%s2920_s0 + $0x70] sm:$0xff]  ;;  %v429_v22 = vpack.c.bf16 %v184_v3, %v183_v2  ;;  %v185_v23 = vmax.f32 %v77_v4, 0.0  ;;  %v186_v24 = vmax.f32 %v78_v8, 0.0  ;;  %v62_v25 = vld [vmem:[%s2920_s0 + $0x178] sm:$0xff]  ;;  %v96_v28 = vld [vmem:[%s2920_s0 + $0x288] sm:$0xff] }
  0x18   :  { %1464 = vmatpush3.bf16.msra.mxu0 %v403_v52  ;;  %v61_v21 = vld [vmem:[%s2920_s0 + $0x170] sm:$0xff]  ;;  %v344_v26 = vpack.c.bf16 %v239_v10, %v232_v9  ;;  %v405_v29 = vpack.c.bf16 %v136_v7, %v135_v6  ;;  %v346_v30 = vpack.c.bf16 %v241_v16, %v234_v15  ;;  %v111_v31 = vld [vmem:[%s2920_s0 + $0x300] sm:$0xff]  ;;  %v112_v32 = vld [vmem:[%s2920_s0 + $0x308] sm:$0xff]  ;;  %v421_v33 = vpack.c.bf16 %v168_v12, %v167_v11 }
  0x19   :  { %1528 = vmatpush3.bf16.msra.mxu1 %v419_v53  ;;  %1465 = vmatprep.subr.bf16.mxu0 %v412_v58  ;;  %v414_v34 = vpack.c.bf16 %v154_v14, %v153_v13  ;;  %v137_v35 = vmax.f32 %v29_v19, 0.0  ;;  %v138_v36 = vmax.f32 %v30_v20, 0.0  ;;  %v169_v37 = vmax.f32 %v61_v21, 0.0  ;;  %v79_v41 = vld [vmem:[%s2920_s0 + $0x200] sm:$0xff]  ;;  %v80_v42 = vld [vmem:[%s2920_s0 + $0x208] sm:$0xff]  ;;  %v97_v47 = vld [vmem:[%s2920_s0 + $0x290] sm:$0xff] }
  0x1a   :  { %1529 = vmatprep.subr.bf16.mxu1 %v428_v1  ;;  %510 = vmatprep.mubr.bf16.mxu0 %v344_v26  ;;  %v170_v38 = vmax.f32 %v62_v25, 0.0  ;;  %v203_v39 = vmax.f32 %v95_v27, 0.0  ;;  %v204_v40 = vmax.f32 %v96_v28, 0.0  ;;  %v430_v43 = vpack.c.bf16 %v186_v24, %v185_v23  ;;  %v231_v46 = vld [vmem:[%s2921_s1] sm:$0xff]  ;;  %v98_v48 = vld [vmem:[%s2920_s0 + $0x298] sm:$0xff]  ;;  %v233_v51 = vld [vmem:[%s2921_s1 + $0x10] sm:$0xff] }
  0x1b   :  { %607 = vmatprep.mubr.bf16.mxu1 %v346_v30  ;;  %v219_v44 = vmax.f32 %v111_v31, 0.0  ;;  %v220_v45 = vmax.f32 %v112_v32, 0.0  ;;  %v406_v49 = vpack.c.bf16 %v138_v36, %v137_v35  ;;  %v238_v50 = vld [vmem:[%s2921_s1 + $0x38] sm:$0xff]  ;;  %v240_v52 = vld [vmem:[%s2921_s1 + $0x48] sm:$0xff]  ;;  %v187_v53 = vmax.f32 %v79_v41, 0.0  ;;  %v81_v57 = vld [vmem:[%s2920_s0 + $0x210] sm:$0xff] }
  0x1c   :  { %1466 = vmatpush3.bf16.msra.mxu0 %v404_v5  ;;  %v188_v54 = vmax.f32 %v80_v42, 0.0  ;;  %v422_v55 = vpack.c.bf16 %v170_v38, %v169_v37  ;;  %v439_v56 = vpack.c.bf16 %v204_v40, %v203_v39  ;;  %v82_v58 = vld [vmem:[%s2920_s0 + $0x218] sm:$0xff]  ;;  %v113_v59 = vld [vmem:[%s2920_s0 + $0x310] sm:$0xff]  ;;  %v205_v63 = vmax.f32 %v97_v47, 0.0  ;;  %v248_v3 = vld [vmem:[%s2921_s1 + $0x88] sm:$0xff] }
  0x1d   :  { %1530 = vmatpush3.bf16.msra.mxu1 %v420_v17  ;;  %1467 = vmatprep.subr.bf16.mxu0 %v413_v18  ;;  %v447_v60 = vpack.c.bf16 %v220_v45, %v219_v44  ;;  %v246_v61 = vld [vmem:[%s2921_s1 + $0x78] sm:$0xff]  ;;  %v253_v62 = vld [vmem:[%s2921_s1 + $0xb0] sm:$0xff]  ;;  %v206_v0 = vmax.f32 %v98_v48, 0.0  ;;  %v343_v2 = vpack.c.bf16 %v238_v50, %v231_v46  ;;  %v255_v4 = vld [vmem:[%s2921_s1 + $0xc0] sm:$0xff]  ;;  %v221_v5 = vmax.f32 %v113_v59, 0.0 }
  0x1e   :  { %1531 = vmatprep.subr.bf16.mxu1 %v429_v22  ;;  %v114_v1 = vld [vmem:[%s2920_s0 + $0x318] sm:$0xff]  ;;  %v99_v7 = vld [vmem:[%s2920_s0 + $0x2a0] sm:$0xff]  ;;  %v345_v8 = vpack.c.bf16 %v240_v52, %v233_v51  ;;  %v431_v9 = vpack.c.bf16 %v188_v54, %v187_v53  ;;  %v189_v10 = vmax.f32 %v81_v57, 0.0  ;;  %v190_v11 = vmax.f32 %v82_v58, 0.0  ;;  %v100_v12 = vld [vmem:[%s2920_s0 + $0x2a8] sm:$0xff] }
  0x1f   :  { %v222_v6 = vmax.f32 %v114_v1, 0.0  ;;  %v351_v13 = vpack.c.bf16 %v253_v62, %v246_v61  ;;  %v207_v14 = vmax.f32 %v99_v7, 0.0  ;;  %v208_v15 = vmax.f32 %v100_v12, 0.0  ;;  %v245_v17 = vld [vmem:[%s2921_s1 + $0x70] sm:$0xff]  ;;  %v252_v18 = vld [vmem:[%s2921_s1 + $0xa8] sm:$0xff]  ;;  %v83_v20 = vld [vmem:[%s2920_s0 + $0x220] sm:$0xff] }
  0x20   :  { %1468 = vmatpush3.bf16.msra.mxu0 %v405_v29  ;;  %v353_v16 = vpack.c.bf16 %v255_v4, %v248_v3  ;;  %v440_v19 = vpack.c.bf16 %v206_v0, %v205_v63  ;;  %v84_v21 = vld [vmem:[%s2920_s0 + $0x228] sm:$0xff]  ;;  %v247_v22 = vld [vmem:[%s2921_s1 + $0x80] sm:$0xff]  ;;  %v254_v23 = vld [vmem:[%s2921_s1 + $0xb8] sm:$0xff]  ;;  %v432_v27 = vpack.c.bf16 %v190_v11, %v189_v10 }
  0x21   :  { %1532 = vmatpush3.bf16.msra.mxu1 %v421_v33  ;;  %1469 = vmatprep.subr.bf16.mxu0 %v414_v34  ;;  %v260_v24 = vld [vmem:[%s2921_s1 + $0xe8] sm:$0xff]  ;;  %v448_v25 = vpack.c.bf16 %v222_v6, %v221_v5  ;;  %v101_v26 = vld [vmem:[%s2920_s0 + $0x2b0] sm:$0xff]  ;;  %v267_v28 = vld [vmem:[%s2921_s1 + $0x120] sm:$0xff]  ;;  %v441_v32 = vpack.c.bf16 %v208_v15, %v207_v14  ;;  %v191_v33 = vmax.f32 %v83_v20, 0.0  ;;  %v192_v34 = vmax.f32 %v84_v21, 0.0 }
  0x22   :  { %1533 = vmatprep.subr.bf16.mxu1 %v430_v43  ;;  %v262_v29 = vld [vmem:[%s2921_s1 + $0xf8] sm:$0xff]  ;;  %v269_v31 = vld [vmem:[%s2921_s1 + $0x130] sm:$0xff]  ;;  %v115_v35 = vld [vmem:[%s2920_s0 + $0x320] sm:$0xff]  ;;  %v209_v37 = vmax.f32 %v101_v26, 0.0  ;;  %v350_v43 = vpack.c.bf16 %v252_v18, %v245_v17  ;;  %v352_v44 = vpack.c.bf16 %v254_v23, %v247_v22  ;;  %v358_v45 = vpack.c.bf16 %v267_v28, %v260_v24 }
  0x23   :  { %v102_v30 = vld [vmem:[%s2920_s0 + $0x2b8] sm:$0xff]  ;;  %v116_v36 = vld [vmem:[%s2920_s0 + $0x328] sm:$0xff]  ;;  %v85_v39 = vld [vmem:[%s2920_s0 + $0x230] sm:$0xff]  ;;  %v223_v41 = vmax.f32 %v115_v35, 0.0  ;;  %v433_v50 = vpack.c.bf16 %v192_v34, %v191_v33 }
  0x24   :  { %1470 = vmatpush3.bf16.msra.mxu0 %v406_v49  ;;  %v210_v38 = vmax.f32 %v102_v30, 0.0  ;;  %v86_v40 = vld [vmem:[%s2920_s0 + $0x238] sm:$0xff]  ;;  %v224_v42 = vmax.f32 %v116_v36, 0.0  ;;  %v103_v47 = vld [vmem:[%s2920_s0 + $0x2c0] sm:$0xff]  ;;  %v104_v48 = vld [vmem:[%s2920_s0 + $0x2c8] sm:$0xff]  ;;  %v360_v49 = vpack.c.bf16 %v269_v31, %v262_v29  ;;  %v193_v51 = vmax.f32 %v85_v39, 0.0 }
  0x25   :  { %1534 = vmatpush3.bf16.msra.mxu1 %v422_v55  ;;  %1583 = vmatprep.subr.bf16.mxu0 %v439_v56  ;;  %v194_v52 = vmax.f32 %v86_v40, 0.0  ;;  %v117_v53 = vld [vmem:[%s2920_s0 + $0x330] sm:$0xff]  ;;  %v259_v54 = vld [vmem:[%s2921_s1 + $0xe0] sm:$0xff]  ;;  %v211_v56 = vmax.f32 %v103_v47, 0.0  ;;  %v212_v57 = vmax.f32 %v104_v48, 0.0  ;;  %v88_v59 = vld [vmem:[%s2920_s0 + $0x248] sm:$0xff] }
  0x26   :  { %1661 = vmatprep.subr.bf16.mxu1 %v447_v60  ;;  %v449_v46 = vpack.c.bf16 %v224_v42, %v223_v41  ;;  %v442_v55 = vpack.c.bf16 %v210_v38, %v209_v37  ;;  %v87_v58 = vld [vmem:[%s2920_s0 + $0x240] sm:$0xff]  ;;  %v225_v61 = vmax.f32 %v117_v53, 0.0  ;;  %v266_v62 = vld [vmem:[%s2921_s1 + $0x118] sm:$0xff]  ;;  %v261_v63 = vld [vmem:[%s2921_s1 + $0xf0] sm:$0xff] }
  0x27   :  { %511 = vmatmul.mubr.bf16.vlgmr.msra.gmra.mrb[0].mxu0 %v343_v2  ;;  %v268_v0 = vld [vmem:[%s2921_s1 + $0x128] sm:$0xff]  ;;  %v274_v2 = vld [vmem:[%s2921_s1 + $0x158] sm:$0xff]  ;;  %v281_v3 = vld [vmem:[%s2921_s1 + $0x190] sm:$0xff]  ;;  %v434_v6 = vpack.c.bf16 %v194_v52, %v193_v51  ;;  %v195_v7 = vmax.f32 %v87_v58, 0.0  ;;  %v443_v12 = vpack.c.bf16 %v212_v57, %v211_v56  ;;  %v357_v17 = vpack.c.bf16 %v266_v62, %v259_v54 }
  0x28   :  { %608 = vmatmul.mubr.bf16.vlgmr.msra.gmra.mrb[0].mxu1 %v345_v8  ;;  %1584 = vmatpush3.bf16.msra.mxu0 %v431_v9  ;;  %v276_v4 = vld [vmem:[%s2921_s1 + $0x168] sm:$0xff]  ;;  %v283_v5 = vld [vmem:[%s2921_s1 + $0x1a0] sm:$0xff]  ;;  %v196_v8 = vmax.f32 %v88_v59, 0.0  ;;  %v105_v10 = vld [vmem:[%s2920_s0 + $0x2d0] sm:$0xff]  ;;  %v365_v20 = vpack.c.bf16 %v281_v3, %v274_v2 }
  0x29   :  { %1662 = vmatpush3.bf16.msra.mxu1 %v447_v60  ;;  %518 = vmatprep.mubr.bf16.mxu0 %v351_v13  ;;  %v118_v60 = vld [vmem:[%s2920_s0 + $0x338] sm:$0xff]  ;;  %v213_v13 = vmax.f32 %v105_v10, 0.0  ;;  %v89_v15 = vld [vmem:[%s2920_s0 + $0x250] sm:$0xff]  ;;  %v119_v18 = vld [vmem:[%s2920_s0 + $0x340] sm:$0xff]  ;;  %v367_v21 = vpack.c.bf16 %v283_v5, %v276_v4 }
  0x2a   :  { %615 = vmatprep.mubr.bf16.mxu1 %v353_v16  ;;  %1585 = vmatprep.subr.bf16.mxu0 %v440_v19  ;;  %v226_v1 = vmax.f32 %v118_v60, 0.0  ;;  %v106_v11 = vld [vmem:[%s2920_s0 + $0x2d8] sm:$0xff]  ;;  %v359_v19 = vpack.c.bf16 %v268_v0, %v261_v63  ;;  %v120_v22 = vld [vmem:[%s2920_s0 + $0x348] sm:$0xff]  ;;  %v227_v23 = vmax.f32 %v119_v18, 0.0  ;;  %v435_v24 = vpack.c.bf16 %v196_v8, %v195_v7  ;;  %v107_v28 = vld [vmem:[%s2920_s0 + $0x2e0] sm:$0xff] }
  0x2b   :  { %1663 = vmatprep.subr.bf16.mxu1 %v448_v25  ;;  %v214_v14 = vmax.f32 %v106_v11, 0.0  ;;  %v90_v16 = vld [vmem:[%s2920_s0 + $0x258] sm:$0xff]  ;;  %v108_v30 = vld [vmem:[%s2920_s0 + $0x2e8] sm:$0xff]  ;;  %v215_v31 = vmax.f32 %v107_v28, 0.0  ;;  %v273_v34 = vld [vmem:[%s2921_s1 + $0x150] sm:$0xff] }
  0x2c   :  { %1586 = vmatpush3.bf16.msra.mxu0 %v432_v27  ;;  %v450_v9 = vpack.c.bf16 %v226_v1, %v225_v61  ;;  %v198_v26 = vmax.f32 %v90_v16, 0.0  ;;  %v228_v27 = vmax.f32 %v120_v22, 0.0  ;;  %v92_v33 = vld [vmem:[%s2920_s0 + $0x268] sm:$0xff]  ;;  %v275_v36 = vld [vmem:[%s2921_s1 + $0x160] sm:$0xff]  ;;  %v216_v38 = vmax.f32 %v108_v30, 0.0  ;;  %v282_v39 = vld [vmem:[%s2921_s1 + $0x198] sm:$0xff] }
  0x2d   :  { %1587 = vmatprep.subr.bf16.mxu0 %v441_v32  ;;  %1664 = vmatpush3.bf16.msra.mxu1 %v448_v25  ;;  %v197_v25 = vmax.f32 %v89_v15, 0.0  ;;  %v444_v29 = vpack.c.bf16 %v214_v14, %v213_v13  ;;  %v91_v32 = vld [vmem:[%s2920_s0 + $0x260] sm:$0xff]  ;;  %v280_v35 = vld [vmem:[%s2921_s1 + $0x188] sm:$0xff]  ;;  %v290_v42 = vld [vmem:[%s2921_s1 + $0x1d8] sm:$0xff]  ;;  %v366_v57 = vpack.c.bf16 %v282_v39, %v275_v36 }
  0x2e   :  { %1665 = vmatprep.subr.bf16.mxu1 %v449_v46  ;;  %v451_v37 = vpack.c.bf16 %v228_v27, %v227_v23  ;;  %v288_v40 = vld [vmem:[%s2921_s1 + $0x1c8] sm:$0xff]  ;;  %v295_v41 = vld [vmem:[%s2921_s1 + $0x200] sm:$0xff]  ;;  %v109_v47 = vld [vmem:[%s2920_s0 + $0x2f0] sm:$0xff]  ;;  %v445_v48 = vpack.c.bf16 %v216_v38, %v215_v31  ;;  %v364_v53 = vpack.c.bf16 %v280_v35, %v273_v34 }
  0x2f   :  { %519 = vmatmul.mubr.bf16.gmra.mrb[4].mxu0 %v350_v43  ;;  %v297_v43 = vld [vmem:[%s2921_s1 + $0x210] sm:$0xff]  ;;  %v94_v52 = vld [vmem:[%s2920_s0 + $0x278] sm:$0xff]  ;;  %v372_v58 = vpack.c.bf16 %v295_v41, %v288_v40  ;;  %v287_v3 = vld [vmem:[%s2921_s1 + $0x1c0] sm:$0xff] }
  0x30   :  { %616 = vmatmul.mubr.bf16.gmra.mrb[4].mxu1 %v352_v44  ;;  %526 = vmatprep.mubr.bf16.mxu0 %v358_v45  ;;  %v436_v44 = vpack.c.bf16 %v198_v26, %v197_v25  ;;  %v199_v45 = vmax.f32 %v91_v32, 0.0  ;;  %v93_v51 = vld [vmem:[%s2920_s0 + $0x270] sm:$0xff]  ;;  %v122_v56 = vld [vmem:[%s2920_s0 + $0x358] sm:$0xff]  ;;  %v374_v61 = vpack.c.bf16 %v297_v43, %v290_v42  ;;  %v202_v0 = vmax.f32 %v94_v52, 0.0  ;;  %v304_v10 = vld [vmem:[%s2921_s1 + $0x248] sm:$0xff] }
  0x31   :  { %623 = vmatprep.mubr.bf16.mxu1 %v360_v49  ;;  %1588 = vmatpush3.bf16.msra.mxu0 %v433_v50  ;;  %v110_v49 = vld [vmem:[%s2920_s0 + $0x2f8] sm:$0xff]  ;;  %v217_v50 = vmax.f32 %v109_v47, 0.0  ;;  %v230_v60 = vmax.f32 %v122_v56, 0.0  ;;  %v201_v63 = vmax.f32 %v93_v51, 0.0  ;;  %v289_v5 = vld [vmem:[%s2921_s1 + $0x1d0] sm:$0xff]  ;;  %v311_v11 = vld [vmem:[%s2921_s1 + $0x280] sm:$0xff] }
  0x32   :  { %1589 = vmatprep.subr.bf16.mxu0 %v442_v55  ;;  %1666 = vmatpush3.bf16.msra.mxu1 %v449_v46  ;;  %v200_v46 = vmax.f32 %v92_v33, 0.0  ;;  %v218_v54 = vmax.f32 %v110_v49, 0.0  ;;  %v121_v55 = vld [vmem:[%s2920_s0 + $0x350] sm:$0xff]  ;;  %v294_v4 = vld [vmem:[%s2921_s1 + $0x1f8] sm:$0xff]  ;;  %v381_v15 = vpack.c.bf16 %v311_v11, %v304_v10  ;;  %v303_v18 = vld [vmem:[%s2921_s1 + $0x240] sm:$0xff] }
  0x33   :  { %1667 = vmatprep.subr.bf16.mxu1 %v450_v9  ;;  %v229_v59 = vmax.f32 %v121_v55, 0.0  ;;  %v302_v7 = vld [vmem:[%s2921_s1 + $0x238] sm:$0xff]  ;;  %v309_v8 = vld [vmem:[%s2921_s1 + $0x270] sm:$0xff]  ;;  %v315_v28 = vld [vmem:[%s2921_s1 + $0x2a0] sm:$0xff] }
  0x34   :  { %v437_v62 = vpack.c.bf16 %v200_v46, %v199_v45  ;;  %v446_v1 = vpack.c.bf16 %v218_v54, %v217_v50  ;;  %v379_v14 = vpack.c.bf16 %v309_v8, %v302_v7  ;;  %v301_v16 = vld [vmem:[%s2921_s1 + $0x230] sm:$0xff]  ;;  %v318_v22 = vld [vmem:[%s2921_s1 + $0x2b8] sm:$0xff]  ;;  %v324_v31 = vld [vmem:[%s2921_s1 + $0x2e8] sm:$0xff] }
  0x35   :  { %1590 = vmatpush3.bf16.msra.mxu0 %v434_v6  ;;  %v452_v2 = vpack.c.bf16 %v230_v60, %v229_v59  ;;  %v296_v6 = vld [vmem:[%s2921_s1 + $0x208] sm:$0xff]  ;;  %v325_v23 = vld [vmem:[%s2921_s1 + $0x2f0] sm:$0xff]  ;;  %v330_v32 = vld [vmem:[%s2921_s1 + $0x318] sm:$0xff] }
  0x36   :  { %1591 = vmatprep.subr.bf16.mxu0 %v443_v12  ;;  %1668 = vmatpush3.bf16.msra.mxu1 %v450_v9  ;;  %v438_v9 = vpack.c.bf16 %v202_v0, %v201_v63  ;;  %v371_v12 = vpack.c.bf16 %v294_v4, %v287_v3  ;;  %v373_v13 = vpack.c.bf16 %v296_v6, %v289_v5  ;;  %v317_v30 = vld [vmem:[%s2921_s1 + $0x2b0] sm:$0xff]  ;;  %v332_v34 = vld [vmem:[%s2921_s1 + $0x328] sm:$0xff]  ;;  %v339_v35 = vld [vmem:[%s2921_s1 + $0x360] sm:$0xff] }
  0x37   :  { %527 = vmatmul.mubr.bf16.gmra.mrb[8].mxu0 %v357_v17  ;;  %1669 = vmatprep.subr.bf16.mxu1 %v451_v37  ;;  %v308_v17 = vld [vmem:[%s2921_s1 + $0x268] sm:$0xff]  ;;  %v388_v27 = vpack.c.bf16 %v325_v23, %v318_v22  ;;  %v337_v33 = vld [vmem:[%s2921_s1 + $0x350] sm:$0xff]  ;;  %v395_v39 = vpack.c.bf16 %v339_v35, %v332_v34  ;;  %v331_v42 = vld [vmem:[%s2921_s1 + $0x320] sm:$0xff] }
  0x38   :  { %624 = vmatmul.mubr.bf16.gmra.mrb[8].mxu1 %v359_v19  ;;  %534 = vmatprep.mubr.bf16.mxu0 %v365_v20  ;;  %v310_v19 = vld [vmem:[%s2921_s1 + $0x278] sm:$0xff]  ;;  %v316_v20 = vld [vmem:[%s2921_s1 + $0x2a8] sm:$0xff]  ;;  %v393_v38 = vpack.c.bf16 %v337_v33, %v330_v32  ;;  %v329_v40 = vld [vmem:[%s2921_s1 + $0x310] sm:$0xff] }
  0x39   :  { %631 = vmatprep.mubr.bf16.mxu1 %v367_v21  ;;  %1592 = vmatpush3.bf16.msra.mxu0 %v435_v24  ;;  %v323_v21 = vld [vmem:[%s2921_s1 + $0x2e0] sm:$0xff]  ;;  %v378_v24 = vpack.c.bf16 %v308_v17, %v301_v16  ;;  %v380_v25 = vpack.c.bf16 %v310_v19, %v303_v18  ;;  %v336_v41 = vld [vmem:[%s2921_s1 + $0x348] sm:$0xff]  ;;  %v338_v43 = vld [vmem:[%s2921_s1 + $0x358] sm:$0xff] }
  0x3a   :  { %1593 = vmatprep.subr.bf16.mxu0 %v444_v29  ;;  %1670 = vmatpush3.bf16.msra.mxu1 %v451_v37  ;;  %v386_v26 = vpack.c.bf16 %v323_v21, %v316_v20  ;;  %v322_v29 = vld [vmem:[%s2921_s1 + $0x2d8] sm:$0xff]  ;;  %v387_v37 = vpack.c.bf16 %v324_v31, %v317_v30  ;;  %v243_v45 = vld [vmem:[%s2921_s1 + $0x60] sm:$0xff]  ;;  %v237_v46 = vld [vmem:[%s2921_s1 + $0x30] sm:$0xff]  ;;  %v394_v49 = vpack.c.bf16 %v338_v43, %v331_v42 }
  0x3b   :  { %1671 = vmatprep.subr.bf16.mxu1 %v452_v2  ;;  %v385_v36 = vpack.c.bf16 %v322_v29, %v315_v28  ;;  %v244_v47 = vld [vmem:[%s2921_s1 + $0x68] sm:$0xff]  ;;  %v235_v52 = vld [vmem:[%s2921_s1 + $0x20] sm:$0xff]  ;;  %v258_v55 = vld [vmem:[%s2921_s1 + $0xd8] sm:$0xff] }
  0x3c   :  { %v349_v51 = vpack.c.bf16 %v244_v47, %v237_v46  ;;  %v251_v54 = vld [vmem:[%s2921_s1 + $0xa0] sm:$0xff]  ;;  %v250_v56 = vld [vmem:[%s2921_s1 + $0x98] sm:$0xff]  ;;  %v272_v59 = vld [vmem:[%s2921_s1 + $0x148] sm:$0xff] }
  0x3d   :  { %1594 = vmatpush3.bf16.msra.mxu0 %v436_v44  ;;  %v236_v44 = vld [vmem:[%s2921_s1 + $0x28] sm:$0xff]  ;;  %v249_v0 = vld [vmem:[%s2921_s1 + $0x90] sm:$0xff]  ;;  %v271_v3 = vld [vmem:[%s2921_s1 + $0x140] sm:$0xff] }
  0x3e   :  { %1595 = vmatprep.subr.bf16.mxu0 %v445_v48  ;;  %1672 = vmatpush3.bf16.msra.mxu1 %v452_v2  ;;  %v392_v48 = vpack.c.bf16 %v336_v41, %v329_v40  ;;  %v348_v50 = vpack.c.bf16 %v243_v45, %v236_v44  ;;  %v264_v2 = vld [vmem:[%s2921_s1 + $0x108] sm:$0xff]  ;;  %v279_v4 = vld [vmem:[%s2921_s1 + $0x180] sm:$0xff]  ;;  %v286_v5 = vld [vmem:[%s2921_s1 + $0x1b8] sm:$0xff] }
  0x3f   :  { %535 = vmatmul.mubr.bf16.gmra.mrb[12].mxu0 %v364_v53  ;;  %v242_v53 = vld [vmem:[%s2921_s1 + $0x58] sm:$0xff]  ;;  %v293_v6 = vld [vmem:[%s2921_s1 + $0x1f0] sm:$0xff]  ;;  %v300_v7 = vld [vmem:[%s2921_s1 + $0x228] sm:$0xff]  ;;  %v370_v10 = vpack.c.bf16 %v286_v5, %v279_v4 }
  0x40   :  { %632 = vmatmul.mubr.bf16.gmra.mrb[12].mxu1 %v366_v57  ;;  %542 = vmatprep.mubr.bf16.mxu0 %v372_v58  ;;  %v257_v57 = vld [vmem:[%s2921_s1 + $0xd0] sm:$0xff]  ;;  %v347_v60 = vpack.c.bf16 %v242_v53, %v235_v52  ;;  %v377_v11 = vpack.c.bf16 %v300_v7, %v293_v6  ;;  %v307_v16 = vld [vmem:[%s2921_s1 + $0x260] sm:$0xff]  ;;  %v314_v17 = vld [vmem:[%s2921_s1 + $0x298] sm:$0xff] }
  0x41   :  { %639 = vmatprep.mubr.bf16.mxu1 %v374_v61  ;;  %1596 = vmatpush3.bf16.msra.mxu0 %v437_v62  ;;  %v265_v58 = vld [vmem:[%s2921_s1 + $0x110] sm:$0xff]  ;;  %v356_v61 = vpack.c.bf16 %v258_v55, %v251_v54  ;;  %v355_v62 = vpack.c.bf16 %v257_v57, %v250_v56  ;;  %v328_v19 = vld [vmem:[%s2921_s1 + $0x308] sm:$0xff]  ;;  %v384_v22 = vpack.c.bf16 %v314_v17, %v307_v16  ;;  %v335_v28 = vld [vmem:[%s2921_s1 + $0x340] sm:$0xff] }
  0x42   :  { %1597 = vmatprep.subr.bf16.mxu0 %v446_v1  ;;  %v363_v63 = vpack.c.bf16 %v272_v59, %v265_v58  ;;  %v256_v1 = vld [vmem:[%s2921_s1 + $0xc8] sm:$0xff]  ;;  %v321_v18 = vld [vmem:[%s2921_s1 + $0x2d0] sm:$0xff]  ;;  %v342_v29 = vld [vmem:[%s2921_s1 + $0x378] sm:$0xff] }
  0x43   :  { %v354_v8 = vpack.c.bf16 %v256_v1, %v249_v0  ;;  %v391_v23 = vpack.c.bf16 %v328_v19, %v321_v18  ;;  %v398_v32 = vpack.c.bf16 %v342_v29, %v335_v28  ;;  %v291_v33 = vld [vmem:[%s2921_s1 + $0x1e0] sm:$0xff]  ;;  %v298_v34 = vld [vmem:[%s2921_s1 + $0x218] sm:$0xff]  ;;  %v312_v40 = vld [vmem:[%s2921_s1 + $0x288] sm:$0xff] }
  0x44   :  { %v306_v35 = vld [vmem:[%s2921_s1 + $0x258] sm:$0xff]  ;;  %v320_v41 = vld [vmem:[%s2921_s1 + $0x2c8] sm:$0xff]  ;;  %v327_v42 = vld [vmem:[%s2921_s1 + $0x300] sm:$0xff] }
  0x45   :  { %1598 = vmatpush3.bf16.msra.mxu0 %v438_v9  ;;  %v362_v9 = vpack.c.bf16 %v271_v3, %v264_v2  ;;  %v390_v44 = vpack.c.bf16 %v327_v42, %v320_v41  ;;  %v319_v45 = vld [vmem:[%s2921_s1 + $0x2c0] sm:$0xff]  ;;  %v326_v46 = vld [vmem:[%s2921_s1 + $0x2f8] sm:$0xff]  ;;  %v340_v52 = vld [vmem:[%s2921_s1 + $0x368] sm:$0xff] }
  0x46   :  { %v334_v47 = vld [vmem:[%s2921_s1 + $0x338] sm:$0xff] }
  0x47   :  { %543 = vmatmul.mubr.bf16.gmra.mrb[16].mxu0 %v371_v12  ;;  %v263_v12 = vld [vmem:[%s2921_s1 + $0x100] sm:$0xff] }
  0x48   :  { %640 = vmatmul.mubr.bf16.gmra.mrb[16].mxu1 %v373_v13  ;;  %550 = vmatprep.mubr.bf16.mxu0 %v379_v14  ;;  %v270_v13 = vld [vmem:[%s2921_s1 + $0x138] sm:$0xff] }
  0x49   :  { %647 = vmatprep.mubr.bf16.mxu1 %v381_v15  ;;  %v278_v14 = vld [vmem:[%s2921_s1 + $0x178] sm:$0xff]  ;;  %v285_v15 = vld [vmem:[%s2921_s1 + $0x1b0] sm:$0xff]  ;;  %v361_v20 = vpack.c.bf16 %v270_v13, %v263_v12 }
  0x4a   :  { %v369_v21 = vpack.c.bf16 %v285_v15, %v278_v14 }
  0x4f   :  { %551 = vmatmul.mubr.bf16.gmra.mrb[20].mxu0 %v378_v24  ;;  %v277_v24 = vld [vmem:[%s2921_s1 + $0x170] sm:$0xff] }
  0x50   :  { %648 = vmatmul.mubr.bf16.gmra.mrb[20].mxu1 %v380_v25  ;;  %558 = vmatprep.mubr.bf16.mxu0 %v386_v26  ;;  %v284_v25 = vld [vmem:[%s2921_s1 + $0x1a8] sm:$0xff] }
  0x51   :  { %655 = vmatprep.mubr.bf16.mxu1 %v388_v27  ;;  %v292_v26 = vld [vmem:[%s2921_s1 + $0x1e8] sm:$0xff]  ;;  %v299_v27 = vld [vmem:[%s2921_s1 + $0x220] sm:$0xff]  ;;  %v368_v30 = vpack.c.bf16 %v284_v25, %v277_v24 }
  0x52   :  { %v376_v31 = vpack.c.bf16 %v299_v27, %v292_v26 }
  0x57   :  { %559 = vmatmul.mubr.bf16.gmra.mrb[24].mxu0 %v385_v36  ;;  %v313_v36 = vld [vmem:[%s2921_s1 + $0x290] sm:$0xff] }
  0x58   :  { %656 = vmatmul.mubr.bf16.gmra.mrb[24].mxu1 %v387_v37  ;;  %566 = vmatprep.mubr.bf16.mxu0 %v393_v38  ;;  %v375_v37 = vpack.c.bf16 %v298_v34, %v291_v33  ;;  %v383_v38 = vpack.c.bf16 %v313_v36, %v306_v35 }
  0x59   :  { %663 = vmatprep.mubr.bf16.mxu1 %v395_v39  ;;  %v305_v39 = vld [vmem:[%s2921_s1 + $0x250] sm:$0xff] }
  0x5a   :  { %v382_v43 = vpack.c.bf16 %v312_v40, %v305_v39 }
  0x5f   :  { %567 = vmatmul.mubr.bf16.gmra.mrb[28].mxu0 %v392_v48  ;;  %v341_v48 = vld [vmem:[%s2921_s1 + $0x370] sm:$0xff] }
  0x60   :  { %664 = vmatmul.mubr.bf16.gmra.mrb[28].mxu1 %v394_v49  ;;  %704 = vmatprep.mubr.bf16.mxu0 %v348_v50  ;;  %v389_v49 = vpack.c.bf16 %v326_v46, %v319_v45  ;;  %v397_v50 = vpack.c.bf16 %v341_v48, %v334_v47 }
  0x61   :  { %1673 = vmatprep.mubr.msk.bf16.mxu1 %vm453_vm0, %v349_v51  ;;  %v333_v51 = vld [vmem:[%s2921_s1 + $0x330] sm:$0xff] }
  0x62   :  { %v396_v53 = vpack.c.bf16 %v340_v52, %v333_v51 }
  0x67   :  { %705 = vmatmul.mubr.bf16.vlgmr.msra.gmra.mrb[32].mxu0 %v347_v60 }
  0x68   :  { %1674 = vmatmul.mubr.msk.bf16.vlgmr.msra.gmra.mrb[32].mxu1 %vm453_vm0, %v356_v61  ;;  %712 = vmatprep.mubr.bf16.mxu0 %v355_v62 }
  0x69   :  { %1677 = vmatprep.mubr.msk.bf16.mxu1 %vm453_vm0, %v363_v63 }
  0x6f   :  { %713 = vmatmul.mubr.bf16.gmra.mrb[36].mxu0 %v354_v8 }
  0x70   :  { %720 = vmatprep.mubr.bf16.mxu0 %v362_v9  ;;  %1678 = vmatmul.mubr.msk.bf16.gmra.mrb[36].mxu1 %vm453_vm0, %v370_v10 }
  0x71   :  { %1681 = vmatprep.mubr.msk.bf16.mxu1 %vm453_vm0, %v377_v11 }
  0x77   :  { %721 = vmatmul.mubr.bf16.gmra.mrb[40].mxu0 %v361_v20 }
  0x78   :  { %728 = vmatprep.mubr.bf16.mxu0 %v369_v21  ;;  %1682 = vmatmul.mubr.msk.bf16.gmra.mrb[40].mxu1 %vm453_vm0, %v384_v22 }
  0x79   :  { %1685 = vmatprep.mubr.msk.bf16.mxu1 %vm453_vm0, %v391_v23 }
  0x7f   :  { %729 = vmatmul.mubr.bf16.gmra.mrb[44].mxu0 %v368_v30 }
  0x80   :  { %736 = vmatprep.mubr.bf16.mxu0 %v376_v31  ;;  %1686 = vmatmul.mubr.msk.bf16.gmra.mrb[44].mxu1 %vm453_vm0, %v398_v32 }
  0x87   :  { %737 = vmatmul.mubr.bf16.gmra.mrb[48].mxu0 %v375_v37 }
  0x88   :  { %744 = vmatprep.mubr.bf16.mxu0 %v383_v38 }
  0x8f   :  { %745 = vmatmul.mubr.bf16.gmra.mrb[52].mxu0 %v382_v43 }
  0x90   :  { %752 = vmatprep.mubr.bf16.mxu0 %v390_v44 }
  0x97   :  { %753 = vmatmul.mubr.bf16.gmra.mrb[56].mxu0 %v389_v49 }
  0x98   :  { %760 = vmatprep.mubr.bf16.mxu0 %v397_v50 }
  0x9f   :  { %761 = vmatmul.mubr.bf16.gmra.mrb[60].mxu0 %v396_v53 }
  0xfa   :  { %v1471_v54 = vpop.f32.mrb[0].mxu0 }
  0xfb   :  { %v1535_v55 = vpop.f32.mrb[0].mxu1  ;;  %v1472_v56 = vpop.f32.mrb[1].mxu0 }
  0xfc   :  { %v1473_v57 = vadd.f32 %v1472_v56, %v1471_v54  ;;  %v1536_v58 = vpop.f32.mrb[1].mxu1  ;;  %v1474_v59 = vpop.f32.mrb[2].mxu0 }
  0xfd   :  { %v1537_v60 = vadd.f32 %v1536_v58, %v1535_v55  ;;  %v1538_v61 = vpop.f32.mrb[2].mxu1  ;;  %v1475_v62 = vpop.f32.mrb[3].mxu0 }
  0xfe   :  { %v1476_v63 = vadd.f32 %v1475_v62, %v1474_v59  ;;  %v1539_v0 = vpop.f32.mrb[3].mxu1 }
  0xff   :  { %v2419_v1 = vadd.f32 %v1537_v60, %v1473_v57  ;;  %v1540_v2 = vadd.f32 %v1539_v0, %v1538_v61 }
 0x101   :  { %v2421_v3 = vadd.f32 %v1540_v2, %v1476_v63 }
 0x102   :  { %v1477_v4 = vpop.f32.mrb[4].mxu0 }
 0x103   :  { %v1541_v5 = vpop.f32.mrb[4].mxu1  ;;  %v1478_v6 = vpop.f32.mrb[5].mxu0 }
 0x104   :  { %v1479_v7 = vadd.f32 %v1478_v6, %v1477_v4  ;;  %v1542_v8 = vpop.f32.mrb[5].mxu1  ;;  %v1480_v9 = vpop.f32.mrb[6].mxu0 }
 0x105   :  { %v1543_v10 = vadd.f32 %v1542_v8, %v1541_v5  ;;  %v1544_v11 = vpop.f32.mrb[6].mxu1  ;;  %v1481_v12 = vpop.f32.mrb[7].mxu0 }
 0x106   :  { %v1482_v13 = vadd.f32 %v1481_v12, %v1480_v9  ;;  %v1545_v14 = vpop.f32.mrb[7].mxu1 }
 0x107   :  { %v2423_v15 = vadd.f32 %v1543_v10, %v1479_v7  ;;  %v1546_v16 = vadd.f32 %v1545_v14, %v1544_v11 }
 0x109   :  { %v2425_v17 = vadd.f32 %v1546_v16, %v1482_v13 }
 0x10a   :  { %v1483_v18 = vpop.f32.mrb[8].mxu0 }
 0x10b   :  { %v1547_v19 = vpop.f32.mrb[8].mxu1  ;;  %v1484_v20 = vpop.f32.mrb[9].mxu0 }
 0x10c   :  { %v1485_v21 = vadd.f32 %v1484_v20, %v1483_v18  ;;  %v1548_v22 = vpop.f32.mrb[9].mxu1  ;;  %v1486_v23 = vpop.f32.mrb[10].mxu0 }
 0x10d   :  { %v1549_v24 = vadd.f32 %v1548_v22, %v1547_v19  ;;  %v1550_v25 = vpop.f32.mrb[10].mxu1  ;;  %v1487_v26 = vpop.f32.mrb[11].mxu0 }
 0x10e   :  { %v1488_v27 = vadd.f32 %v1487_v26, %v1486_v23  ;;  %v1551_v28 = vpop.f32.mrb[11].mxu1 }
 0x10f   :  { %v2427_v29 = vadd.f32 %v1549_v24, %v1485_v21  ;;  %v1552_v30 = vadd.f32 %v1551_v28, %v1550_v25 }
 0x111   :  { %v2429_v31 = vadd.f32 %v1552_v30, %v1488_v27 }
 0x112   :  { %v1489_v32 = vpop.f32.mrb[12].mxu0 }
 0x113   :  { %v1553_v33 = vpop.f32.mrb[12].mxu1  ;;  %v1490_v34 = vpop.f32.mrb[13].mxu0 }
 0x114   :  { %v1491_v35 = vadd.f32 %v1490_v34, %v1489_v32  ;;  %v1554_v36 = vpop.f32.mrb[13].mxu1  ;;  %v1492_v37 = vpop.f32.mrb[14].mxu0 }
 0x115   :  { %v1555_v38 = vadd.f32 %v1554_v36, %v1553_v33  ;;  %v1556_v39 = vpop.f32.mrb[14].mxu1  ;;  %v1493_v40 = vpop.f32.mrb[15].mxu0 }
 0x116   :  { %v1494_v41 = vadd.f32 %v1493_v40, %v1492_v37  ;;  %v1557_v42 = vpop.f32.mrb[15].mxu1 }
 0x117   :  { %v2431_v43 = vadd.f32 %v1555_v38, %v1491_v35  ;;  %v1558_v44 = vadd.f32 %v1557_v42, %v1556_v39 }
 0x119   :  { %v2433_v45 = vadd.f32 %v1558_v44, %v1494_v41 }
 0x11a   :  { %v1495_v46 = vpop.f32.mrb[16].mxu0 }
 0x11b   :  { %v1559_v47 = vpop.f32.mrb[16].mxu1  ;;  %v1496_v48 = vpop.f32.mrb[17].mxu0 }
 0x11c   :  { %v1497_v49 = vadd.f32 %v1496_v48, %v1495_v46  ;;  %v1560_v50 = vpop.f32.mrb[17].mxu1  ;;  %v1498_v51 = vpop.f32.mrb[18].mxu0 }
 0x11d   :  { %v1561_v52 = vadd.f32 %v1560_v50, %v1559_v47  ;;  %v1562_v53 = vpop.f32.mrb[18].mxu1  ;;  %v1499_v54 = vpop.f32.mrb[19].mxu0 }
 0x11e   :  { %v1500_v55 = vadd.f32 %v1499_v54, %v1498_v51  ;;  %v1563_v56 = vpop.f32.mrb[19].mxu1 }
 0x11f   :  { %v2435_v57 = vadd.f32 %v1561_v52, %v1497_v49  ;;  %v1564_v58 = vadd.f32 %v1563_v56, %v1562_v53 }
 0x121   :  { %v2437_v59 = vadd.f32 %v1564_v58, %v1500_v55 }
 0x122   :  { %v1501_v60 = vpop.f32.mrb[20].mxu0 }
 0x123   :  { %v1565_v61 = vpop.f32.mrb[20].mxu1  ;;  %v1502_v62 = vpop.f32.mrb[21].mxu0 }
 0x124   :  { %v1503_v63 = vadd.f32 %v1502_v62, %v1501_v60  ;;  %v1566_v0 = vpop.f32.mrb[21].mxu1  ;;  %v1504_v2 = vpop.f32.mrb[22].mxu0 }
 0x125   :  { %v1567_v4 = vadd.f32 %v1566_v0, %v1565_v61  ;;  %v1568_v5 = vpop.f32.mrb[22].mxu1  ;;  %v1505_v6 = vpop.f32.mrb[23].mxu0 }
 0x126   :  { %v1506_v7 = vadd.f32 %v1505_v6, %v1504_v2  ;;  %v1569_v8 = vpop.f32.mrb[23].mxu1 }
 0x127   :  { %v2439_v9 = vadd.f32 %v1567_v4, %v1503_v63  ;;  %v1570_v10 = vadd.f32 %v1569_v8, %v1568_v5 }
 0x129   :  { %v2441_v11 = vadd.f32 %v1570_v10, %v1506_v7 }
 0x12a   :  { %v1507_v12 = vpop.f32.mrb[24].mxu0 }
 0x12b   :  { %v1571_v13 = vpop.f32.mrb[24].mxu1  ;;  %v1508_v14 = vpop.f32.mrb[25].mxu0 }
 0x12c   :  { %v1509_v16 = vadd.f32 %v1508_v14, %v1507_v12  ;;  %v1572_v18 = vpop.f32.mrb[25].mxu1  ;;  %v1510_v19 = vpop.f32.mrb[26].mxu0 }
 0x12d   :  { %v1573_v20 = vadd.f32 %v1572_v18, %v1571_v13  ;;  %v1574_v21 = vpop.f32.mrb[26].mxu1  ;;  %v1511_v22 = vpop.f32.mrb[27].mxu0 }
 0x12e   :  { %v1512_v23 = vadd.f32 %v1511_v22, %v1510_v19  ;;  %v1575_v24 = vpop.f32.mrb[27].mxu1 }
 0x12f   :  { %v2443_v25 = vadd.f32 %v1573_v20, %v1509_v16  ;;  %v1576_v26 = vadd.f32 %v1575_v24, %v1574_v21 }
 0x131   :  { %v2445_v27 = vadd.f32 %v1576_v26, %v1512_v23 }
 0x132   :  { %v1513_v28 = vpop.f32.mrb[28].mxu0 }
 0x133   :  { %v1577_v30 = vpop.f32.mrb[28].mxu1  ;;  %v1514_v32 = vpop.f32.mrb[29].mxu0 }
 0x134   :  { %v1515_v33 = vadd.f32 %v1514_v32, %v1513_v28  ;;  %v1578_v34 = vpop.f32.mrb[29].mxu1  ;;  %v1516_v35 = vpop.f32.mrb[30].mxu0 }
 0x135   :  { %v1579_v36 = vadd.f32 %v1578_v34, %v1577_v30  ;;  %v1580_v37 = vpop.f32.mrb[30].mxu1  ;;  %v1517_v38 = vpop.f32.mrb[31].mxu0 }
 0x136   :  { %v1518_v39 = vadd.f32 %v1517_v38, %v1516_v35  ;;  %v1581_v40 = vpop.f32.mrb[31].mxu1 }
 0x137   :  { %v2447_v41 = vadd.f32 %v1579_v36, %v1515_v33  ;;  %v1582_v42 = vadd.f32 %v1581_v40, %v1580_v37 }
 0x139   :  { %v2449_v44 = vadd.f32 %v1582_v42, %v1518_v39 }
 0x13a   :  { %v1599_v46 = vpop.f32.mrb[32].mxu0 }
 0x13b   :  { %v1600_v47 = vpop.f32.mrb[33].mxu0  ;;  %v1675_v48 = vpop.f32.mrb[32].mxu1 }
 0x13c   :  { %v1601_v49 = vadd.f32 %v1600_v47, %v1599_v46  ;;  %v1602_v50 = vpop.f32.mrb[34].mxu0  ;;  %v803_v51 = vpop.f32.mrb[33].mxu1 }
 0x13d   :  { %v1603_v52 = vpop.f32.mrb[35].mxu0  ;;  %v1676_v53 = vpop.f32.mrb[34].mxu1 }
 0x13e   :  { %v1604_v54 = vadd.f32 %v1603_v52, %v1602_v50  ;;  %v707_v55 = vadd.f32 %v1601_v49, %v2419_v1  ;;  %v806_v56 = vpop.f32.mrb[35].mxu1 }
 0x140   :  { %v2452_v58 = vadd.f32 %v803_v51, %v707_v55  ;;  %v710_v60 = vadd.f32 %v1604_v54, %v2421_v3 }
 0x142   :  { %v2455_v61 = vadd.f32 %v806_v56, %v710_v60  ;;  %v1605_v62 = vpop.f32.mrb[36].mxu0  ;;  %v867_v63 = vsel %vm866_vm1, %v2452_v58, 0.0  ;;  %v915_v3 = vmul.f32 %v2452_v58, %v2452_v58 }
 0x143   :  { %v1606_v0 = vpop.f32.mrb[37].mxu0  ;;  %868 = vadd.xlane.f32.xlu0 %v867_v63  ;;  %v2459_v2 = vpop.f32.mrb[36].mxu1 }
 0x144   :  { %v1607_v4 = vadd.f32 %v1606_v0, %v1605_v62  ;;  %v1608_v5 = vpop.f32.mrb[38].mxu0  ;;  %v916_v1 = vmul.f32 %v2455_v61, %v2455_v61  ;;  %v819_v6 = vpop.f32.mrb[37].mxu1  ;;  %v870_v14 = vsel %vm866_vm1, %v2455_v61, 0.0 }
 0x145   :  { %v1609_v7 = vpop.f32.mrb[39].mxu0  ;;  %v1680_v8 = vpop.f32.mrb[38].mxu1 }
 0x146   :  { %v715_v10 = vadd.f32 %v1607_v4, %v2423_v15  ;;  %v1610_v12 = vadd.f32 %v1609_v7, %v1608_v5  ;;  %v934_v13 = vsel %vm866_vm1, %v916_v1, 0.0  ;;  %v822_v16 = vpop.f32.mrb[39].mxu1  ;;  %v931_v15 = vsel %vm866_vm1, %v915_v3, 0.0 }
 0x147   :  { %935 = vadd.xlane.f32.xlu1 %v934_v13  ;;  %871 = vadd.xlane.f32.xlu0 %v870_v14 }
 0x148   :  { %v2469_v18 = vadd.f32 %v1675_v48, %v715_v10  ;;  %v718_v19 = vadd.f32 %v1610_v12, %v2425_v17 }
 0x14a   :  { %v2472_v20 = vadd.f32 %v1676_v53, %v718_v19  ;;  %v1611_v21 = vpop.f32.mrb[40].mxu0  ;;  %v873_v22 = vsel %vm866_vm1, %v2469_v18, 0.0  ;;  %v917_v23 = vmul.f32 %v2469_v18, %v2469_v18 }
 0x14b   :  { %v1612_v24 = vpop.f32.mrb[41].mxu0  ;;  %874 = vadd.xlane.f32.xlu1 %v873_v22  ;;  %932 = vadd.xlane.f32.xlu0 %v931_v15  ;;  %v2479_v26 = vpop.f32.mrb[40].mxu1 }
 0x14c   :  { %v1613_v28 = vadd.f32 %v1612_v24, %v1611_v21  ;;  %v1614_v30 = vpop.f32.mrb[42].mxu0  ;;  %v835_v32 = vpop.f32.mrb[41].mxu1  ;;  %v876_v33 = vsel %vm866_vm1, %v2472_v20, 0.0  ;;  %v937_v37 = vsel %vm866_vm1, %v917_v23, 0.0  ;;  %v918_v38 = vmul.f32 %v2472_v20, %v2472_v20 }
 0x14d   :  { %v1615_v17 = vpop.f32.mrb[43].mxu0  ;;  %v2483_v34 = vpop.f32.mrb[42].mxu1 }
 0x14e   :  { %v1616_v35 = vadd.f32 %v1615_v17, %v1614_v30  ;;  %v723_v36 = vadd.f32 %v1613_v28, %v2427_v29  ;;  %v838_v39 = vpop.f32.mrb[43].mxu1  ;;  %v940_v48 = vsel %vm866_vm1, %v918_v38, 0.0 }
 0x14f   :  { %877 = vadd.xlane.f32.xlu1 %v876_v33  ;;  %938 = vadd.xlane.f32.xlu0 %v937_v37 }
 0x150   :  { %v2489_v40 = vadd.f32 %v819_v6, %v723_v36  ;;  %v726_v42 = vadd.f32 %v1616_v35, %v2429_v31 }
 0x152   :  { %v2492_v46 = vadd.f32 %v822_v16, %v726_v42  ;;  %v1617_v47 = vpop.f32.mrb[44].mxu0  ;;  %v879_v29 = vsel %vm866_vm1, %v2489_v40, 0.0  ;;  %v919_v49 = vmul.f32 %v2489_v40, %v2489_v40 }
 0x153   :  { %v1618_v50 = vpop.f32.mrb[45].mxu0  ;;  %941 = vadd.xlane.f32.xlu1 %v940_v48  ;;  %880 = vadd.xlane.f32.xlu0 %v879_v29  ;;  %v2499_v51 = vpop.f32.mrb[44].mxu1 }
 0x154   :  { %v1619_v52 = vadd.f32 %v1618_v50, %v1617_v47  ;;  %v1620_v53 = vpop.f32.mrb[46].mxu0  ;;  %v2501_v54 = vpop.f32.mrb[45].mxu1  ;;  %v882_v55 = vsel %vm866_vm1, %v2492_v46, 0.0  ;;  %v943_v63 = vsel %vm866_vm1, %v919_v49, 0.0  ;;  %v920_v0 = vmul.f32 %v2492_v46, %v2492_v46 }
 0x155   :  { %v1621_v31 = vpop.f32.mrb[47].mxu0  ;;  %v2505_v56 = vpop.f32.mrb[46].mxu1 }
 0x156   :  { %v731_v60 = vadd.f32 %v1619_v52, %v2431_v43  ;;  %v1622_v62 = vadd.f32 %v1621_v31, %v1620_v53  ;;  %v2511_v4 = vpop.f32.mrb[47].mxu1  ;;  %v946_v43 = vsel %vm866_vm1, %v920_v0, 0.0  ;;  %v1728_v31 = vmov 0  }
 0x157   :  { %883 = vadd.xlane.f32.xlu1 %v882_v55  ;;  %944 = vadd.xlane.f32.xlu0 %v943_v63 }
 0x158   :  { %v2514_v5 = vadd.f32 %v2459_v2, %v731_v60  ;;  %v734_v1 = vadd.f32 %v1622_v62, %v2433_v45  ;;  %1693 = vset.pattern.permute.xlu1 %v1728_v31  ;;  %1692 = vset.pattern.permute.xlu0 %v1728_v31 }
 0x15a   :  { %v2517_v6 = vadd.f32 %v1680_v8, %v734_v1  ;;  %v1623_v7 = vpop.f32.mrb[48].mxu0  ;;  %v885_v3 = vsel %vm866_vm1, %v2514_v5, 0.0  ;;  %v921_v10 = vmul.f32 %v2514_v5, %v2514_v5 }
 0x15b   :  { %v1624_v12 = vpop.f32.mrb[49].mxu0  ;;  %947 = vadd.xlane.f32.xlu1 %v946_v43  ;;  %886 = vadd.xlane.f32.xlu0 %v885_v3 }
 0x15c   :  { %v1625_v13 = vadd.f32 %v1624_v12, %v1623_v7  ;;  %v1626_v14 = vpop.f32.mrb[50].mxu0  ;;  %v888_v45 = vsel %vm866_vm1, %v2517_v6, 0.0  ;;  %v949_v19 = vsel %vm866_vm1, %v921_v10, 0.0  ;;  %v922_v21 = vmul.f32 %v2517_v6, %v2517_v6 }
 0x15d   :  { %v1627_v2 = vpop.f32.mrb[51].mxu0 }
 0x15e   :  { %v1628_v8 = vadd.f32 %v1627_v2, %v1626_v14  ;;  %v739_v16 = vadd.f32 %v1625_v13, %v2435_v57  ;;  %v952_v28 = vsel %vm866_vm1, %v922_v21, 0.0 }
 0x15f   :  { %889 = vadd.xlane.f32.xlu1 %v888_v45  ;;  %950 = vadd.xlane.f32.xlu0 %v949_v19 }
 0x160   :  { %v2530_v22 = vadd.f32 %v835_v32, %v739_v16  ;;  %v742_v15 = vadd.f32 %v1628_v8, %v2437_v59 }
 0x162   :  { %v2533_v23 = vadd.f32 %v838_v39, %v742_v15  ;;  %v1629_v24 = vpop.f32.mrb[52].mxu0  ;;  %v891_v30 = vsel %vm866_vm1, %v2530_v22, 0.0  ;;  %v923_v57 = vmul.f32 %v2530_v22, %v2530_v22 }
 0x163   :  { %v1630_v17 = vpop.f32.mrb[53].mxu0  ;;  %953 = vadd.xlane.f32.xlu1 %v952_v28  ;;  %892 = vadd.xlane.f32.xlu0 %v891_v30 }
 0x164   :  { %v1631_v33 = vadd.f32 %v1630_v17, %v1629_v24  ;;  %v1632_v35 = vpop.f32.mrb[54].mxu0  ;;  %v894_v59 = vsel %vm866_vm1, %v2533_v23, 0.0  ;;  %v955_v38 = vsel %vm866_vm1, %v923_v57, 0.0  ;;  %v924_v39 = vmul.f32 %v2533_v23, %v2533_v23 }
 0x165   :  { %v1633_v32 = vpop.f32.mrb[55].mxu0 }
 0x166   :  { %v747_v36 = vadd.f32 %v1631_v33, %v2439_v9  ;;  %v1634_v37 = vadd.f32 %v1633_v32, %v1632_v35  ;;  %v958_v49 = vsel %vm866_vm1, %v924_v39, 0.0 }
 0x167   :  { %895 = vadd.xlane.f32.xlu1 %v894_v59  ;;  %956 = vadd.xlane.f32.xlu0 %v955_v38 }
 0x168   :  { %v2547_v42 = vadd.f32 %v2479_v26, %v747_v36  ;;  %v750_v47 = vadd.f32 %v1634_v37, %v2441_v11 }
 0x16a   :  { %v2551_v48 = vadd.f32 %v2483_v34, %v750_v47  ;;  %v1635_v29 = vpop.f32.mrb[56].mxu0  ;;  %v897_v9 = vsel %vm866_vm1, %v2547_v42, 0.0  ;;  %v925_v50 = vmul.f32 %v2547_v42, %v2547_v42 }
 0x16b   :  { %v1636_v52 = vpop.f32.mrb[57].mxu0  ;;  %959 = vadd.xlane.f32.xlu1 %v958_v49  ;;  %898 = vadd.xlane.f32.xlu0 %v897_v9 }
 0x16c   :  { %v1637_v53 = vadd.f32 %v1636_v52, %v1635_v29  ;;  %v1638_v26 = vpop.f32.mrb[58].mxu0  ;;  %v900_v34 = vsel %vm866_vm1, %v2551_v48, 0.0  ;;  %v961_v62 = vsel %vm866_vm1, %v925_v50, 0.0  ;;  %v926_v63 = vmul.f32 %v2551_v48, %v2551_v48 }
 0x16d   :  { %v1639_v11 = vpop.f32.mrb[59].mxu0 }
 0x16e   :  { %v1640_v55 = vadd.f32 %v1639_v11, %v1638_v26  ;;  %v755_v60 = vadd.f32 %v1637_v53, %v2443_v25  ;;  %v964_v3 = vsel %vm866_vm1, %v926_v63, 0.0 }
 0x16f   :  { %901 = vadd.xlane.f32.xlu1 %v900_v34  ;;  %962 = vadd.xlane.f32.xlu0 %v961_v62 }
 0x170   :  { %v2565_v0 = vadd.f32 %v2501_v54, %v755_v60  ;;  %v758_v1 = vadd.f32 %v1640_v55, %v2445_v27 }
 0x172   :  { %v2569_v7 = vadd.f32 %v2511_v4, %v758_v1  ;;  %v1641_v43 = vpop.f32.mrb[60].mxu0  ;;  %v903_v25 = vsel %vm866_vm1, %v2565_v0, 0.0  ;;  %v927_v10 = vmul.f32 %v2565_v0, %v2565_v0 }
 0x173   :  { %v1642_v12 = vpop.f32.mrb[61].mxu0  ;;  %965 = vadd.xlane.f32.xlu1 %v964_v3  ;;  %904 = vadd.xlane.f32.xlu0 %v903_v25 }
 0x174   :  { %v1643_v13 = vadd.f32 %v1642_v12, %v1641_v43  ;;  %v1644_v54 = vpop.f32.mrb[62].mxu0  ;;  %v906_v27 = vsel %vm866_vm1, %v2569_v7, 0.0  ;;  %v967_v45 = vsel %vm866_vm1, %v927_v10, 0.0  ;;  %v928_v8 = vmul.f32 %v2569_v7, %v2569_v7 }
 0x175   :  { %v1645_v14 = vpop.f32.mrb[63].mxu0 }
 0x176   :  { %v763_v4 = vadd.f32 %v1643_v13, %v2447_v41  ;;  %v1646_v2 = vadd.f32 %v1645_v14, %v1644_v54  ;;  %v970_v15 = vsel %vm866_vm1, %v928_v8, 0.0 }
 0x177   :  { %907 = vadd.xlane.f32.xlu1 %v906_v27  ;;  %968 = vadd.xlane.f32.xlu0 %v967_v45  ;;  %v2625_v45 = vld [vmem:[%s2922_s2 + $0x8] sm:$0xff] }
 0x178   :  { %v2583_v16 = vadd.f32 %v2499_v51, %v763_v4  ;;  %v766_v19 = vadd.f32 %v1646_v2, %v2449_v44 }
 0x17a   :  { %v2587_v21 = vadd.f32 %v2505_v56, %v766_v19  ;;  %v909_v41 = vsel %vm866_vm1, %v2583_v16, 0.0  ;;  %v929_v24 = vmul.f32 %v2583_v16, %v2583_v16 }
 0x17b   :  { %971 = vadd.xlane.f32.xlu1 %v970_v15  ;;  %910 = vadd.xlane.f32.xlu0 %v909_v41 }
 0x17c   :  { %v912_v28 = vsel %vm866_vm1, %v2587_v21, 0.0  ;;  %v973_v51 = vsel %vm866_vm1, %v929_v24, 0.0  ;;  %v930_v44 = vmul.f32 %v2587_v21, %v2587_v21 }
 0x17e   :  { %v976_v56 = vsel %vm866_vm1, %v930_v44, 0.0 }
 0x17f   :  { %913 = vadd.xlane.f32.xlu1 %v912_v28  ;;  %974 = vadd.xlane.f32.xlu0 %v973_v51 }
 0x183   :  { %977 = vadd.xlane.f32.xlu1 %v976_v56 }
 0x1d0   :  { %v869_v30 = vpop.xlane.xlu0 %868 }
 0x1d1   :  { %v2600_v33 = vmul.f32 0.020408163, %v869_v30  ;;  %v2634_v30 = vld [vmem:[%s2922_s2] sm:$0xff] }
 0x1d3   :  { %v1011_v38 = vmul.f32 %v2600_v33, %v2600_v33 }
 0x1d4   :  { %v936_v57 = vpop.xlane.xlu1 %935  ;;  %v872_v17 = vpop.xlane.xlu0 %871 }
 0x1d5   :  { %v2602_v35 = vmul.f32 0.020408163, %v872_v17  ;;  %v996_v32 = vmul.f32 0.020408163, %v936_v57 }
 0x1d7   :  { %v1012_v59 = vmul.f32 %v2602_v35, %v2602_v35 }
 0x1d8   :  { %v875_v36 = vpop.xlane.xlu1 %874  ;;  %v933_v37 = vpop.xlane.xlu0 %932 }
 0x1d9   :  { %v1028_v39 = vsub.f32 %v996_v32, %v1012_v59  ;;  %v995_v47 = vmul.f32 0.020408163, %v933_v37  ;;  %v2608_v29 = vmul.f32 0.020408163, %v875_v36 }
 0x1db   :  { %v1044_v49 = vmax.f32 %v1028_v39, 0.0  ;;  %v1027_v9 = vsub.f32 %v995_v47, %v1011_v38  ;;  %v1013_v11 = vmul.f32 %v2608_v29, %v2608_v29 }
 0x1dc   :  { %v878_v50 = vpop.xlane.xlu1 %877  ;;  %v939_v52 = vpop.xlane.xlu0 %938 }
 0x1dd   :  { %v1076_v53 = vadd.f32 1e-05, %v1044_v49  ;;  %v1043_v26 = vmax.f32 %v1027_v9, 0.0  ;;  %v2610_v31 = vmul.f32 0.020408163, %v878_v50 }
 0x1de   :  { %v997_v34 = vmul.f32 0.020408163, %v939_v52 }
 0x1df   :  { %1696 = vrsqrt.f32 %v1076_v53  ;;  %v1075_v55 = vadd.f32 1e-05, %v1043_v26  ;;  %v1014_v1 = vmul.f32 %v2610_v31, %v2610_v31  ;;  %v2646_v26 = vld [vmem:[%s2922_s2 + $0x10] sm:$0xff] }
 0x1e0   :  { %v1029_v60 = vsub.f32 %v997_v34, %v1013_v11  ;;  %v942_v62 = vpop.xlane.xlu1 %941  ;;  %v881_v63 = vpop.xlane.xlu0 %880 }
 0x1e1   :  { %1698 = vrsqrt.f32 %v1075_v55  ;;  %v998_v43 = vmul.f32 0.020408163, %v942_v62  ;;  %v2616_v3 = vmul.f32 0.020408163, %v881_v63 }
 0x1e2   :  { %v1045_v25 = vmax.f32 %v1029_v60, 0.0 }
 0x1e3   :  { %v1030_v10 = vsub.f32 %v998_v43, %v1014_v1  ;;  %v1015_v27 = vmul.f32 %v2616_v3, %v2616_v3 }
 0x1e4   :  { %v1077_v12 = vadd.f32 1e-05, %v1045_v25  ;;  %v884_v13 = vpop.xlane.xlu1 %883  ;;  %v945_v54 = vpop.xlane.xlu0 %944 }
 0x1e5   :  { %v1046_v14 = vmax.f32 %v1030_v10, 0.0  ;;  %v2620_v4 = vmul.f32 0.020408163, %v884_v13  ;;  %v999_v2 = vmul.f32 0.020408163, %v945_v54  ;;  %v2659_v13 = vld [vmem:[%s2922_s2 + $0x18] sm:$0xff] }
 0x1e6   :  { %1700 = vrsqrt.f32 %v1077_v12 }
 0x1e7   :  { %v1078_v8 = vadd.f32 1e-05, %v1046_v14  ;;  %v1031_v19 = vsub.f32 %v999_v2, %v1015_v27  ;;  %v1016_v15 = vmul.f32 %v2620_v4, %v2620_v4 }
 0x1e8   :  { %v948_v41 = vpop.xlane.xlu1 %947  ;;  %v887_v24 = vpop.xlane.xlu0 %886 }
 0x1e9   :  { %v1697_v28 = vpop.eup %1696  ;;  %1702 = vrsqrt.f32 %v1078_v8  ;;  %v1047_v51 = vmax.f32 %v1031_v19, 0.0  ;;  %v1000_v44 = vmul.f32 0.020408163, %v948_v41  ;;  %v2629_v56 = vmul.f32 0.020408163, %v887_v24  ;;  %v2668_v19 = vld [vmem:[%s2922_s2 + $0x20] sm:$0xff] }
 0x1ea   :  { %v1108_v57 = vmul.f32 %v1697_v28, %v2625_v45 }
 0x1eb   :  { %v1699_v17 = vpop.eup %1698  ;;  %v1079_v32 = vadd.f32 1e-05, %v1047_v51  ;;  %v1032_v59 = vsub.f32 %v1000_v44, %v1016_v15  ;;  %v1017_v36 = vmul.f32 %v2629_v56, %v2629_v56 }
 0x1ec   :  { %v890_v37 = vpop.xlane.xlu1 %889  ;;  %1226 = vperm.xlu1 %1693, %v1108_v57   ;;  %v951_v38 = vpop.xlane.xlu0 %950  ;;  %v1107_v39 = vmul.f32 %v1699_v17, %v2634_v30  ;;  %v1124_v50 = vmul.f32 %v1108_v57, %v2602_v35 }
 0x1ed   :  { %1704 = vrsqrt.f32 %v1079_v32  ;;  %v1048_v47 = vmax.f32 %v1032_v59, 0.0  ;;  %v2640_v49 = vmul.f32 0.020408163, %v890_v37  ;;  %v1001_v9 = vmul.f32 0.020408163, %v951_v38  ;;  %v2685_v37 = vld [vmem:[%s2922_s2 + $0x28] sm:$0xff] }
 0x1ee   :  { %1221 = vperm.xlu0 %1692, %v1107_v39   ;;  %v1123_v62 = vmul.f32 %v1107_v39, %v2600_v33 }
 0x1ef   :  { %v1080_v52 = vadd.f32 1e-05, %v1048_v47  ;;  %v1033_v53 = vsub.f32 %v1001_v9, %v1017_v36  ;;  %v1018_v34 = vmul.f32 %v2640_v49, %v2640_v49 }
 0x1f0   :  { %v1701_v11 = vpop.eup %1700  ;;  %v954_v55 = vpop.xlane.xlu1 %953  ;;  %1157 = vrot.lane.b32.xlu1 %v1124_v50, %s1729_s19 }
 0x1f1   :  { %v893_v60 = vpop.xlane.xlu0 %892  ;;  %1706 = vrsqrt.f32 %v1080_v52  ;;  %v1049_v35 = vmax.f32 %v1033_v53, 0.0  ;;  %v1002_v63 = vmul.f32 0.020408163, %v954_v55  ;;  %v1109_v43 = vmul.f32 %v1701_v11, %v2646_v26 }
 0x1f2   :  { %v2652_v1 = vmul.f32 0.020408163, %v893_v60  ;;  %1155 = vrot.lane.b32.xlu0 %v1123_v62, %s1729_s19  ;;  %v2703_v60 = vld [vmem:[%s2922_s2 + $0x30] sm:$0xff] }
 0x1f3   :  { %v1703_v25 = vpop.eup %1702  ;;  %v1081_v10 = vadd.f32 1e-05, %v1049_v35  ;;  %v1034_v12 = vsub.f32 %v1002_v63, %v1018_v34  ;;  %v1125_v15 = vmul.f32 %v1109_v43, %v2608_v29 }
 0x1f4   :  { %v1019_v33 = vmul.f32 %v2652_v1, %v2652_v1  ;;  %v896_v54 = vpop.xlane.xlu1 %895  ;;  %1231 = vperm.xlu1 %1693, %v1109_v43   ;;  %v2672_v41 = vmul.f32 %v1703_v25, %v2659_v13 }
 0x1f5   :  { %v957_v14 = vpop.xlane.xlu0 %956  ;;  %1708 = vrsqrt.f32 %v1081_v10  ;;  %v1050_v27 = vmax.f32 %v1034_v12, 0.0  ;;  %v2663_v2 = vmul.f32 0.020408163, %v896_v54 }
 0x1f6   :  { %v1003_v8 = vmul.f32 0.020408163, %v957_v14  ;;  %v1126_v38 = vmul.f32 %v2672_v41, %v2610_v31 }
 0x1f7   :  { %v1705_v24 = vpop.eup %1704  ;;  %v1082_v28 = vadd.f32 1e-05, %v1050_v27  ;;  %v1020_v44 = vmul.f32 %v2663_v2, %v2663_v2 }
 0x1f8   :  { %v1035_v51 = vsub.f32 %v1003_v8, %v1019_v33  ;;  %v960_v57 = vpop.xlane.xlu1 %959  ;;  %1159 = vrot.lane.b32.xlu1 %v1125_v15, %s1729_s19  ;;  %v2678_v32 = vmul.f32 %v1705_v24, %v2668_v19 }
 0x1f9   :  { %v899_v17 = vpop.xlane.xlu0 %898  ;;  %1710 = vrsqrt.f32 %v1082_v28  ;;  %v1004_v36 = vmul.f32 0.020408163, %v960_v57 }
 0x1fa   :  { %v1051_v59 = vmax.f32 %v1035_v51, 0.0  ;;  %v2680_v29 = vmul.f32 0.020408163, %v899_v17  ;;  %v1127_v39 = vmul.f32 %v2678_v32, %v2616_v3 }
 0x1fb   :  { %v1707_v47 = vpop.eup %1706  ;;  %v1036_v50 = vsub.f32 %v1004_v36, %v1020_v44 }
 0x1fc   :  { %v1083_v9 = vadd.f32 1e-05, %v1051_v59  ;;  %v1021_v52 = vmul.f32 %v2680_v29, %v2680_v29  ;;  %v902_v53 = vpop.xlane.xlu1 %901  ;;  %1161 = vrot.lane.b32.xlu1 %v1126_v38, %s1729_s19  ;;  %1163 = vrot.lane.b32.xlu0 %v1127_v39, %s1729_s19  ;;  %v2696_v34 = vmul.f32 %v1707_v47, %v2685_v37 }
 0x1fd   :  { %v963_v11 = vpop.xlane.xlu0 %962  ;;  %v1052_v31 = vmax.f32 %v1036_v50, 0.0  ;;  %v2698_v55 = vmul.f32 0.020408163, %v902_v53 }
 0x1fe   :  { %1712 = vrsqrt.f32 %v1083_v9  ;;  %v1005_v3 = vmul.f32 0.020408163, %v963_v11  ;;  %v1128_v62 = vmul.f32 %v2696_v34, %v2620_v4  ;;  %v2718_v4 = vld [vmem:[%s2922_s2 + $0x38] sm:$0xff] }
 0x1ff   :  { %v1709_v35 = vpop.eup %1708  ;;  %v1084_v63 = vadd.f32 1e-05, %v1052_v31  ;;  %v1022_v25 = vmul.f32 %v2698_v55, %v2698_v55 }
 0x200   :  { %v1037_v43 = vsub.f32 %v1005_v3, %v1021_v52  ;;  %v966_v10 = vpop.xlane.xlu1 %965  ;;  %1165 = vrot.lane.b32.xlu1 %v1128_v62, %s1729_s19  ;;  %v2711_v33 = vmul.f32 %v1709_v35, %v2703_v60 }
 0x201   :  { %v905_v12 = vpop.xlane.xlu0 %904  ;;  %1714 = vrsqrt.f32 %v1084_v63  ;;  %v1006_v14 = vmul.f32 0.020408163, %v966_v10 }
 0x202   :  { %v1053_v54 = vmax.f32 %v1037_v43, 0.0  ;;  %v2713_v27 = vmul.f32 0.020408163, %v905_v12  ;;  %v1129_v8 = vmul.f32 %v2711_v33, %v2629_v56  ;;  %v2733_v56 = vld [vmem:[%s2922_s2 + $0x40] sm:$0xff] }
 0x203   :  { %v1711_v15 = vpop.eup %1710  ;;  %v1038_v28 = vsub.f32 %v1006_v14, %v1022_v25 }
 0x204   :  { %v1085_v24 = vadd.f32 1e-05, %v1053_v54  ;;  %v1023_v51 = vmul.f32 %v2713_v27, %v2713_v27  ;;  %v908_v44 = vpop.xlane.xlu1 %907  ;;  %1167 = vrot.lane.b32.xlu0 %v1129_v8, %s1729_s19  ;;  %v2726_v17 = vmul.f32 %v1711_v15, %v2718_v4 }
 0x205   :  { %v969_v57 = vpop.xlane.xlu0 %968  ;;  %v1054_v59 = vmax.f32 %v1038_v28, 0.0  ;;  %v2728_v36 = vmul.f32 0.020408163, %v908_v44 }
 0x206   :  { %1716 = vrsqrt.f32 %v1085_v24  ;;  %v1007_v38 = vmul.f32 0.020408163, %v969_v57  ;;  %v1130_v39 = vmul.f32 %v2726_v17, %v2640_v49  ;;  %v2746_v49 = vld [vmem:[%s2922_s2 + $0x48] sm:$0xff] }
 0x207   :  { %v1086_v9 = vadd.f32 1e-05, %v1054_v59  ;;  %v1024_v52 = vmul.f32 %v2728_v36, %v2728_v36 }
 0x208   :  { %v1713_v47 = vpop.eup %1712  ;;  %v1039_v50 = vsub.f32 %v1007_v38, %v1023_v51  ;;  %v972_v53 = vpop.xlane.xlu1 %971  ;;  %1169 = vrot.lane.b32.xlu1 %v1130_v39, %s1729_s19  ;;  %v2755_v51 = vld [vmem:[%s2922_s2 + $0x50] sm:$0xff] }
 0x209   :  { %v911_v11 = vpop.xlane.xlu0 %910  ;;  %v2741_v31 = vmul.f32 %v1713_v47, %v2733_v56  ;;  %1718 = vrsqrt.f32 %v1086_v9  ;;  %v1008_v62 = vmul.f32 0.020408163, %v972_v53 }
 0x20a   :  { %v1055_v3 = vmax.f32 %v1039_v50, 0.0  ;;  %v993_v35 = vmul.f32 0.020408163, %v911_v11 }
 0x20b   :  { %v1131_v63 = vmul.f32 %v2741_v31, %v2652_v1  ;;  %v1715_v43 = vpop.eup %1714  ;;  %v1040_v10 = vsub.f32 %v1008_v62, %v1024_v52  ;;  %v2763_v52 = vld [vmem:[%s2922_s2 + $0x58] sm:$0xff] }
 0x20c   :  { %v1087_v25 = vadd.f32 1e-05, %v1055_v3  ;;  %v1025_v12 = vmul.f32 %v993_v35, %v993_v35  ;;  %v914_v54 = vpop.xlane.xlu1 %913  ;;  %v1116_v8 = vmul.f32 %v1715_v43, %v2746_v49  ;;  %v2771_v43 = vld [vmem:[%s2922_s2 + $0x60] sm:$0xff] }
 0x20d   :  { %1171 = vrot.lane.b32.xlu0 %v1131_v63, %s1729_s19  ;;  %v975_v14 = vpop.xlane.xlu0 %974  ;;  %v1056_v15 = vmax.f32 %v1040_v10, 0.0  ;;  %v994_v24 = vmul.f32 0.020408163, %v914_v54  ;;  %v2779_v54 = vld [vmem:[%s2922_s2 + $0x68] sm:$0xff] }
 0x20e   :  { %1720 = vrsqrt.f32 %v1087_v25  ;;  %v1009_v28 = vmul.f32 0.020408163, %v975_v14  ;;  %v1132_v1 = vmul.f32 %v1116_v8, %v2663_v2 }
 0x20f   :  { %v1088_v57 = vadd.f32 1e-05, %v1056_v15  ;;  %v1026_v47 = vmul.f32 %v994_v24, %v994_v24 }
 0x210   :  { %v1717_v44 = vpop.eup %1716  ;;  %v1041_v59 = vsub.f32 %v1009_v28, %v1025_v12  ;;  %v978_v38 = vpop.xlane.xlu1 %977  ;;  %1173 = vrot.lane.b32.xlu1 %v1132_v1, %s1729_s19 }
 0x211   :  { %v1117_v39 = vmul.f32 %v1717_v44, %v2755_v51  ;;  %1722 = vrsqrt.f32 %v1088_v57  ;;  %v1010_v50 = vmul.f32 0.020408163, %v978_v38 }
 0x212   :  { %v1057_v9 = vmax.f32 %v1041_v59, 0.0 }
 0x213   :  { %v1133_v53 = vmul.f32 %v1117_v39, %v2680_v29  ;;  %v1719_v2 = vpop.eup %1718  ;;  %v1042_v3 = vsub.f32 %v1010_v50, %v1026_v47 }
 0x214   :  { %v1089_v11 = vadd.f32 1e-05, %v1057_v9  ;;  %v1118_v62 = vmul.f32 %v1719_v2, %v2763_v52 }
 0x215   :  { %1175 = vrot.lane.b32.xlu0 %v1133_v53, %s1729_s19  ;;  %v1058_v63 = vmax.f32 %v1042_v3, 0.0 }
 0x216   :  { %1724 = vrsqrt.f32 %v1089_v11  ;;  %v1134_v25 = vmul.f32 %v1118_v62, %v2698_v55  ;;  %v2787_v55 = vld [vmem:[%s2922_s2 + $0x70] sm:$0xff] }
 0x217   :  { %v1090_v12 = vadd.f32 1e-05, %v1058_v63 }
 0x218   :  { %v1721_v10 = vpop.eup %1720  ;;  %1177 = vrot.lane.b32.xlu1 %v1134_v25, %s1729_s19 }
 0x219   :  { %v1119_v29 = vmul.f32 %v1721_v10, %v2771_v43  ;;  %1726 = vrsqrt.f32 %v1090_v12 }
 0x21b   :  { %v1135_v14 = vmul.f32 %v1119_v29, %v2713_v27  ;;  %v1723_v15 = vpop.eup %1722  ;;  %v2795_v27 = vld [vmem:[%s2922_s2 + $0x78] sm:$0xff] }
 0x21c   :  { %v1120_v28 = vmul.f32 %v1723_v15, %v2779_v54 }
 0x21d   :  { %1179 = vrot.lane.b32.xlu0 %v1135_v14, %s1729_s19 }
 0x21e   :  { %v1136_v1 = vmul.f32 %v1120_v28, %v2728_v36  ;;  %v1730_v36 = vmov 1  }
 0x220   :  { %v1725_v44 = vpop.eup %1724  ;;  %1181 = vrot.lane.b32.xlu1 %v1136_v1, %s1729_s19 }
 0x221   :  { %v1121_v57 = vmul.f32 %v1725_v44, %v2787_v55 }
 0x223   :  { %v1137_v59 = vmul.f32 %v1121_v57, %v993_v35  ;;  %v1727_v38 = vpop.eup %1726 }
 0x224   :  { %v1122_v47 = vmul.f32 %v1727_v38, %v2795_v27 }
 0x225   :  { %1183 = vrot.lane.b32.xlu0 %v1137_v59, %s1729_s19 }
 0x226   :  { %v1138_v9 = vmul.f32 %v1122_v47, %v994_v24 }
 0x228   :  { %1185 = vrot.lane.b32.xlu1 %v1138_v9, %s1729_s19 }
 0x229   :  { %1236 = vperm.xlu0 %1692, %v2672_v41  }
 0x22c   :  { %1241 = vperm.xlu1 %1693, %v2678_v32  }
 0x22d   :  { %1246 = vperm.xlu0 %1692, %v2696_v34  }
 0x230   :  { %1251 = vperm.xlu1 %1693, %v2711_v33  }
 0x231   :  { %1256 = vperm.xlu0 %1692, %v2726_v17  }
 0x234   :  { %1261 = vperm.xlu1 %1693, %v2741_v31  }
 0x235   :  { %1266 = vperm.xlu0 %1692, %v1116_v8  }
 0x238   :  { %1271 = vperm.xlu1 %1693, %v1117_v39  }
 0x239   :  { %1276 = vperm.xlu0 %1692, %v1118_v62  }
 0x23c   :  { %1281 = vperm.xlu1 %1693, %v1119_v29  }
 0x23d   :  { %1286 = vperm.xlu0 %1692, %v1120_v28  }
 0x240   :  { %1291 = vperm.xlu1 %1693, %v1121_v57  }
 0x241   :  { %1296 = vperm.xlu0 %1692, %v1122_v47  }
 0x244   :  { %1694 = vset.pattern.permute.xlu1 %v1730_v36 }
 0x245   :  { %1695 = vset.pattern.permute.xlu0 %v1730_v36 }
 0x26b   :  { %v2806_v41 = vpop.permute.xlu1 %1226 }
 0x26d   :  { %v2808_v32 = vpop.permute.xlu0 %1221 }
 0x26f   :  { %v1158_v34 = vpop.permute.xlu1 %1157 }
 0x270   :  { %v1204_v33 = vsub.f32 %v2625_v45, %v1158_v34 }
 0x271   :  { %v1156_v17 = vpop.permute.xlu0 %1155 }
 0x272   :  { %v1203_v31 = vsub.f32 %v2634_v30, %v1156_v17  ;;  %1322 = vperm.xlu0 %1695, %v1204_v33   ;;  %v1299_v17 = vmul.f32 %v2808_v32, %v2452_v58 }
 0x273   :  { %v2812_v35 = vpop.permute.xlu1 %1231 }
 0x274   :  { %1317 = vperm.xlu1 %1694, %v1203_v31  }
 0x275   :  { %v1164_v8 = vpop.permute.xlu0 %1163 }
 0x276   :  { %v1207_v24 = vsub.f32 %v2668_v19, %v1164_v8 }
 0x277   :  { %v1160_v39 = vpop.permute.xlu1 %1159 }
 0x278   :  { %v1205_v50 = vsub.f32 %v2646_v26, %v1160_v39  ;;  %1337 = vperm.xlu0 %1695, %v1207_v24  }
 0x279   :  { %v1168_v53 = vpop.permute.xlu0 %1167 }
 0x27a   :  { %v1209_v2 = vsub.f32 %v2703_v60, %v1168_v53  ;;  %1327 = vperm.xlu1 %1694, %v1205_v50  }
 0x27b   :  { %v1162_v11 = vpop.permute.xlu1 %1161 }
 0x27c   :  { %v1206_v45 = vsub.f32 %v2659_v13, %v1162_v11  ;;  %1347 = vperm.xlu0 %1695, %v1209_v2  }
 0x27e   :  { %1332 = vperm.xlu1 %1694, %v1206_v45  }
 0x27f   :  { %v1172_v30 = vpop.permute.xlu0 %1171  ;;  %v1166_v62 = vpop.permute.xlu1 %1165 }
 0x280   :  { %v1211_v3 = vsub.f32 %v2733_v56, %v1172_v30  ;;  %v1208_v63 = vsub.f32 %v2685_v37, %v1166_v62 }
 0x282   :  { %1357 = vperm.xlu0 %1695, %v1211_v3   ;;  %1342 = vperm.xlu1 %1694, %v1208_v63  }
 0x283   :  { %v1170_v19 = vpop.permute.xlu1 %1169 }
 0x284   :  { %v1210_v26 = vsub.f32 %v2718_v4, %v1170_v19 }
 0x286   :  { %1352 = vperm.xlu1 %1694, %v1210_v26  }
 0x287   :  { %v1176_v25 = vpop.permute.xlu0 %1175  ;;  %v1174_v10 = vpop.permute.xlu1 %1173 }
 0x288   :  { %v1213_v60 = vsub.f32 %v2755_v51, %v1176_v25  ;;  %v1212_v13 = vsub.f32 %v2746_v49, %v1174_v10 }
 0x28a   :  { %1367 = vperm.xlu0 %1695, %v1213_v60   ;;  %1362 = vperm.xlu1 %1694, %v1212_v13  }
 0x28b   :  { %v1178_v12 = vpop.permute.xlu1 %1177 }
 0x28c   :  { %v1214_v56 = vsub.f32 %v2763_v52, %v1178_v12 }
 0x28e   :  { %1372 = vperm.xlu1 %1694, %v1214_v56  }
 0x28f   :  { %v1180_v29 = vpop.permute.xlu0 %1179 }
 0x290   :  { %v1215_v37 = vsub.f32 %v2771_v43, %v1180_v29 }
 0x292   :  { %1377 = vperm.xlu0 %1695, %v1215_v37   ;;  %v1182_v14 = vpop.permute.xlu1 %1181 }
 0x293   :  { %v1216_v4 = vsub.f32 %v2779_v54, %v1182_v14 }
 0x295   :  { %1382 = vperm.xlu1 %1694, %v1216_v4  }
 0x297   :  { %v1184_v15 = vpop.permute.xlu0 %1183 }
 0x298   :  { %v1217_v51 = vsub.f32 %v2787_v55, %v1184_v15 }
 0x29a   :  { %1387 = vperm.xlu0 %1695, %v1217_v51   ;;  %v1186_v28 = vpop.permute.xlu1 %1185 }
 0x29b   :  { %v1218_v49 = vsub.f32 %v2795_v27, %v1186_v28  ;;  %v1300_v27 = vmul.f32 %v2806_v41, %v2455_v61  ;;  %v1301_v61 = vmul.f32 %v2812_v35, %v2469_v18 }
 0x29d   :  { %1392 = vperm.xlu1 %1694, %v1218_v49  }
 0x2a8   :  { %v1237_v1 = vpop.permute.xlu0 %1236 }
 0x2a9   :  { %v1302_v30 = vmul.f32 %v1237_v1, %v2472_v20 }
 0x2ab   :  { %v1242_v52 = vpop.permute.xlu1 %1241 }
 0x2ac   :  { %v1247_v44 = vpop.permute.xlu0 %1246  ;;  %v1303_v50 = vmul.f32 %v1242_v52, %v2489_v40 }
 0x2ad   :  { %v1304_v19 = vmul.f32 %v1247_v44, %v2492_v46 }
 0x2af   :  { %v1252_v59 = vpop.permute.xlu1 %1251 }
 0x2b0   :  { %v1257_v57 = vpop.permute.xlu0 %1256  ;;  %v1305_v32 = vmul.f32 %v1252_v59, %v2514_v5 }
 0x2b3   :  { %v1262_v43 = vpop.permute.xlu1 %1261 }
 0x2b4   :  { %v1267_v38 = vpop.permute.xlu0 %1266  ;;  %v1307_v63 = vmul.f32 %v1262_v43, %v2530_v22  ;;  %v1306_v22 = vmul.f32 %v1257_v57, %v2517_v6 }
 0x2b5   :  { %v1308_v37 = vmul.f32 %v1267_v38, %v2533_v23 }
 0x2b7   :  { %v1272_v9 = vpop.permute.xlu1 %1271 }
 0x2b8   :  { %v1277_v47 = vpop.permute.xlu0 %1276  ;;  %v1309_v29 = vmul.f32 %v1272_v9, %v2547_v42 }
 0x2b9   :  { %v1310_v49 = vmul.f32 %v1277_v47, %v2551_v48 }
 0x2bb   :  { %v1282_v54 = vpop.permute.xlu1 %1281 }
 0x2bc   :  { %v2828_v36 = vpop.permute.xlu0 %1286  ;;  %v1311_v44 = vmul.f32 %v1282_v54, %v2565_v0 }
 0x2bd   :  { %v1312_v48 = vmul.f32 %v2828_v36, %v2569_v7 }
 0x2bf   :  { %v2832_v55 = vpop.permute.xlu1 %1291 }
 0x2c0   :  { %v2830_v34 = vpop.permute.xlu0 %1296  ;;  %v1313_v0 = vmul.f32 %v2832_v55, %v2583_v16 }
 0x2c1   :  { %v1314_v7 = vmul.f32 %v2830_v34, %v2587_v21 }
 0x2f1   :  { %v1323_v33 = vpop.permute.xlu0 %1322 }
 0x2f2   :  { %v1396_v31 = vadd.f32 %v1323_v33, %v1300_v27 }
 0x2f3   :  { %v1318_v8 = vpop.permute.xlu1 %1317 }
 0x2f4   :  { %v1412_v24 = vmax.f32 %v1396_v31, 0.0  ;;  %v1395_v39 = vadd.f32 %v1318_v8, %v1299_v17 }
 0x2f6   :  { %1428 = vst.msk [vmem:[%s2923_s3 + $0x8] sm:$0xff] %vm866_vm1, %v1412_v24  ;;  %v1411_v53 = vmax.f32 %v1395_v39, 0.0 }
 0x2f7   :  { %v1338_v2 = vpop.permute.xlu0 %1337 }
 0x2f8   :  { %1427 = vst.msk [vmem:[%s2923_s3] sm:$0xff] %vm866_vm1, %v1411_v53  ;;  %v1399_v58 = vadd.f32 %v1338_v2, %v1303_v50 }
 0x2f9   :  { %v1328_v41 = vpop.permute.xlu1 %1327 }
 0x2fa   :  { %v1415_v40 = vmax.f32 %v1399_v58, 0.0  ;;  %v1397_v11 = vadd.f32 %v1328_v41, %v1301_v61 }
 0x2fb   :  { %v1348_v45 = vpop.permute.xlu0 %1347 }
 0x2fc   :  { %1431 = vst.msk [vmem:[%s2923_s3 + $0x20] sm:$0xff] %vm866_vm1, %v1415_v40  ;;  %v1413_v18 = vmax.f32 %v1397_v11, 0.0  ;;  %v1401_v35 = vadd.f32 %v1348_v45, %v1305_v32 }
 0x2fd   :  { %v1333_v3 = vpop.permute.xlu1 %1332 }
 0x2fe   :  { %1429 = vst.msk [vmem:[%s2923_s3 + $0x10] sm:$0xff] %vm866_vm1, %v1413_v18  ;;  %v1417_v62 = vmax.f32 %v1401_v35, 0.0  ;;  %v1398_v5 = vadd.f32 %v1333_v3, %v1302_v30 }
 0x300   :  { %1433 = vst.msk [vmem:[%s2923_s3 + $0x30] sm:$0xff] %vm866_vm1, %v1417_v62  ;;  %v1414_v20 = vmax.f32 %v1398_v5, 0.0 }
 0x301   :  { %v1358_v26 = vpop.permute.xlu0 %1357  ;;  %v1343_v60 = vpop.permute.xlu1 %1342 }
 0x302   :  { %v1403_v25 = vadd.f32 %v1358_v26, %v1307_v63  ;;  %1430 = vst.msk [vmem:[%s2923_s3 + $0x18] sm:$0xff] %vm866_vm1, %v1414_v20  ;;  %v1400_v10 = vadd.f32 %v1343_v60, %v1304_v19 }
 0x304   :  { %v1419_v13 = vmax.f32 %v1403_v25, 0.0  ;;  %v1416_v12 = vmax.f32 %v1400_v10, 0.0 }
 0x305   :  { %v1353_v46 = vpop.permute.xlu1 %1352 }
 0x306   :  { %1435 = vst.msk [vmem:[%s2923_s3 + $0x40] sm:$0xff] %vm866_vm1, %v1419_v13  ;;  %1432 = vst.msk [vmem:[%s2923_s3 + $0x28] sm:$0xff] %vm866_vm1, %v1416_v12  ;;  %v1402_v56 = vadd.f32 %v1353_v46, %v1306_v22 }
 0x308   :  { %v1418_v14 = vmax.f32 %v1402_v56, 0.0 }
 0x309   :  { %v1368_v4 = vpop.permute.xlu0 %1367  ;;  %v1363_v15 = vpop.permute.xlu1 %1362 }
 0x30a   :  { %v1405_v6 = vadd.f32 %v1368_v4, %v1309_v29  ;;  %1434 = vst.msk [vmem:[%s2923_s3 + $0x38] sm:$0xff] %vm866_vm1, %v1418_v14  ;;  %v1404_v51 = vadd.f32 %v1363_v15, %v1308_v37 }
 0x30c   :  { %v1421_v28 = vmax.f32 %v1405_v6, 0.0  ;;  %v1420_v1 = vmax.f32 %v1404_v51, 0.0 }
 0x30d   :  { %v1373_v23 = vpop.permute.xlu1 %1372 }
 0x30e   :  { %1437 = vst.msk [vmem:[%s2923_s3 + $0x50] sm:$0xff] %vm866_vm1, %v1421_v28  ;;  %1436 = vst.msk [vmem:[%s2923_s3 + $0x48] sm:$0xff] %vm866_vm1, %v1420_v1  ;;  %v1406_v42 = vadd.f32 %v1373_v23, %v1310_v49 }
 0x310   :  { %v1422_v52 = vmax.f32 %v1406_v42, 0.0 }
 0x311   :  { %v1378_v57 = vpop.permute.xlu0 %1377 }
 0x312   :  { %v1407_v59 = vadd.f32 %v1378_v57, %v1311_v44  ;;  %1438 = vst.msk [vmem:[%s2923_s3 + $0x58] sm:$0xff] %vm866_vm1, %v1422_v52 }
 0x314   :  { %v1423_v38 = vmax.f32 %v1407_v59, 0.0  ;;  %v1383_v43 = vpop.permute.xlu1 %1382 }
 0x315   :  { %v1408_v47 = vadd.f32 %v1383_v43, %v1312_v48 }
 0x316   :  { %1439 = vst.msk [vmem:[%s2923_s3 + $0x60] sm:$0xff] %vm866_vm1, %v1423_v38 }
 0x317   :  { %v1424_v9 = vmax.f32 %v1408_v47, 0.0 }
 0x319   :  { %v1388_v54 = vpop.permute.xlu0 %1387  ;;  %1440 = vst.msk [vmem:[%s2923_s3 + $0x68] sm:$0xff] %vm866_vm1, %v1424_v9 }
 0x31a   :  { %v1409_v27 = vadd.f32 %v1388_v54, %v1313_v0 }
 0x31c   :  { %v1425_v36 = vmax.f32 %v1409_v27, 0.0  ;;  %v1393_v33 = vpop.permute.xlu1 %1392 }
 0x31d   :  { %v1410_v17 = vadd.f32 %v1393_v33, %v1314_v7 }
 0x31e   :  { %1441 = vst.msk [vmem:[%s2923_s3 + $0x70] sm:$0xff] %vm866_vm1, %v1425_v36 }
 0x31f   :  { %v1426_v16 = vmax.f32 %v1410_v17, 0.0 }
 0x321   :  { %1442 = vst.msk [vmem:[%s2923_s3 + $0x78] sm:$0xff] %vm866_vm1, %v1426_v16 }

</bundles_post_ra>
